<compile_context>
chip_gen: v5e
topology: v5e:2x2
jax: 0.10.0
libtpu: 0.0.40
codegen_flags: <defaults>
</compile_context>

<pallas_src>
import functools

import jax
import jax.numpy as jnp
from jax import lax
from jax.experimental import pallas as pl
from jax.experimental.pallas import tpu as pltpu

# bf16 MXU inputs, f32 accumulation (set to jnp.float32 for a bit-exact
# f32 reference path when validating against PyTorch).
MATMUL_INPUT_DTYPE = jnp.bfloat16
LN_EPS = 1e-5
VMEM_LIMIT_BYTES = 32 * 1024 * 1024   # explicit scoped-VMEM cap (safe on v5e..v7x)

# Vocab-projection tile sizes (kept in sync between weight prep and the call).
LIN_TM, LIN_TN, LIN_TK = 512, 512, 512


def _round_up(x, m):
    return ((x + m - 1) // m) * m


# ---------------------------------------------------------------------------
# Kernel 1: fused multi-head attention + out-projection + residual + LayerNorm
# ---------------------------------------------------------------------------

def _attn_compute(q, k, v, masked, wq, wk, wv, wo, bo, g, be, *,
                  heads, scale, ln_of_sum, eps):
    """q:(tq,E) f32 (also residual), k/v:(Lk,E) f32, masked: bool (1|tq, Lk)."""
    E = q.shape[-1]
    D = E // heads
    md = MATMUL_INPUT_DTYPE

    # Heads fused: block-diagonal per-head projections as single E-wide matmuls.
    qp = jnp.dot(q.astype(md), wq, preferred_element_type=jnp.float32).astype(md)
    kp = jnp.dot(k.astype(md), wk, preferred_element_type=jnp.float32).astype(md)
    vp = jnp.dot(v.astype(md), wv, preferred_element_type=jnp.float32).astype(md)

    neg = jnp.float32(-1e20)
    head_outs = []
    for h in range(heads):                       # static, unrolled head loop
        lo, hi = h * D, (h + 1) * D
        # energy_h = Q_h @ K_h^T (contract head_dim of both operands, no .T)
        e = lax.dot_general(qp[:, lo:hi], kp[:, lo:hi],
                            (((1,), (1,)), ((), ())),
                            preferred_element_type=jnp.float32)      # (tq, Lk)
        e = jnp.where(masked, neg, e)            # masked_fill BEFORE scaling
        logits = e * scale
        logits = logits - jnp.max(logits, axis=-1, keepdims=True)
        p = jnp.exp(logits)
        p = p * pl.reciprocal(jnp.sum(p, axis=-1, keepdims=True), approx=True)
        head_outs.append(jnp.dot(p.astype(md), vp[:, lo:hi],
                                 preferred_element_type=jnp.float32))  # (tq, D)

    # Single E-wide out-projection instead of H narrow D-contractions.
    ctx = jnp.concatenate(head_outs, axis=-1)                         # (tq, E)
    y = jnp.dot(ctx.astype(md), wo, preferred_element_type=jnp.float32) + bo

    x = y + q if ln_of_sum else y                # norm1: LN(attn + q); dec: LN(attn)
    mu = jnp.mean(x, axis=-1, keepdims=True)
    var = jnp.maximum(jnp.mean(x * x, axis=-1, keepdims=True) - mu * mu, 0.0)
    out = (x - mu) * lax.rsqrt(var + eps) * g + be
    if not ln_of_sum:
        out = out + q                            # decoder block: LN(attn) + x
    return out


def _attn_ln_kernel_keys(m_ref, q_ref, k_ref, v_ref,
                         wq_ref, wk_ref, wv_ref, wo_ref, bo_ref, g_ref, be_ref,
                         o_ref, *, heads, scale, ln_of_sum, eps):
    masked = m_ref[0] == 0.0                     # (1, Lk) key-padding mask
    out = _attn_compute(q_ref[0].astype(jnp.float32),
                        k_ref[0].astype(jnp.float32),
                        v_ref[0].astype(jnp.float32),
                        masked,
                        wq_ref[...], wk_ref[...], wv_ref[...], wo_ref[...],
                        bo_ref[...], g_ref[...], be_ref[...],
                        heads=heads, scale=scale, ln_of_sum=ln_of_sum, eps=eps)
    o_ref[0] = out.astype(o_ref.dtype)


def _attn_ln_kernel_causal(q_ref, k_ref, v_ref,
                           wq_ref, wk_ref, wv_ref, wo_ref, bo_ref, g_ref, be_ref,
                           o_ref, *, heads, scale, ln_of_sum, eps):
    tq = q_ref.shape[1]
    Lk = k_ref.shape[1]
    q0 = pl.program_id(1) * tq                   # global query offset of this tile
    row = lax.broadcasted_iota(jnp.int32, (tq, Lk), 0) + q0
    col = lax.broadcasted_iota(jnp.int32, (tq, Lk), 1)
    masked = col > row                           # causal mask built in-kernel
    out = _attn_compute(q_ref[0].astype(jnp.float32),
                        k_ref[0].astype(jnp.float32),
                        v_ref[0].astype(jnp.float32),
                        masked,
                        wq_ref[...], wk_ref[...], wv_ref[...], wo_ref[...],
                        bo_ref[...], g_ref[...], be_ref[...],
                        heads=heads, scale=scale, ln_of_sum=ln_of_sum, eps=eps)
    o_ref[0] = out.astype(o_ref.dtype)


def fused_attention_ln(values, keys, query, key_valid, attn_p, gamma, beta, *,
                       embed_size, heads, ln_of_sum, causal, tq_max=128):
    """values/keys: (N, Lk, E); query: (N, Lq, E);
    key_valid: (N, 1, Lk) float (ignored when causal=True)."""
    N, Lq, E = query.shape
    Lk = keys.shape[1]
    dt = query.dtype
    scale = 1.0 / float(embed_size) ** 0.5

    tq = Lq if Lq <= tq_max else tq_max
    Lq_pad = _round_up(Lq, tq)
    q_in = query if Lq_pad == Lq else jnp.pad(query, ((0, 0), (0, Lq_pad - Lq), (0, 0)))

    w_spec = pl.BlockSpec((E, E), lambda b, qi: (0, 0))
    vec_spec = pl.BlockSpec((1, E), lambda b, qi: (0, 0))
    common_specs = [
        pl.BlockSpec((1, tq, E), lambda b, qi: (b, qi, 0)),   # query tile
        pl.BlockSpec((1, Lk, E), lambda b, qi: (b, 0, 0)),    # keys
        pl.BlockSpec((1, Lk, E), lambda b, qi: (b, 0, 0)),    # values
        w_spec, w_spec, w_spec, w_spec, vec_spec, vec_spec, vec_spec,
    ]
    common_args = (q_in, keys, values,
                   attn_p["wq_bd"], attn_p["wk_bd"], attn_p["wv_bd"],
                   attn_p["wo_t"], attn_p["bo"], gamma, beta)

    if causal:
        kernel = functools.partial(_attn_ln_kernel_causal, heads=heads,
                                   scale=scale, ln_of_sum=ln_of_sum, eps=LN_EPS)
        in_specs, args = common_specs, common_args
    else:
        kernel = functools.partial(_attn_ln_kernel_keys, heads=heads,
                                   scale=scale, ln_of_sum=ln_of_sum, eps=LN_EPS)
        in_specs = [pl.BlockSpec((1, 1, Lk), lambda b, qi: (b, 0, 0))] + common_specs
        args = (key_valid,) + common_args

    out = pl.pallas_call(
        kernel,
        out_shape=jax.ShapeDtypeStruct((N, Lq_pad, E), dt),
        grid=(N, Lq_pad // tq),
        in_specs=in_specs,
        out_specs=pl.BlockSpec((1, tq, E), lambda b, qi: (b, qi, 0)),
        compiler_params=pltpu.CompilerParams(
            dimension_semantics=("parallel", "parallel"),
            vmem_limit_bytes=VMEM_LIMIT_BYTES),
    )(*args)
    return out if Lq_pad == Lq else out[:, :Lq, :]


# ---------------------------------------------------------------------------
# Kernel 2: fused FFN (Linear -> ReLU -> Linear) + (LayerNorm(ff) + x) epilogue
# ---------------------------------------------------------------------------

def _ffn_ln_kernel(x_ref, w1_ref, b1_ref, w2_ref, b2_ref, g_ref, be_ref, o_ref, *, eps):
    x = x_ref[...].astype(jnp.float32)                    # (tm, E)
    md = MATMUL_INPUT_DTYPE
    h = jnp.dot(x.astype(md), w1_ref[...], preferred_element_type=jnp.float32)
    h = jnp.maximum(h + b1_ref[...], 0.0)                 # (tm, F), stays on-chip
    f = jnp.dot(h.astype(md), w2_ref[...], preferred_element_type=jnp.float32)
    f = f + b2_ref[...]
    mu = jnp.mean(f, axis=-1, keepdims=True)
    var = jnp.maximum(jnp.mean(f * f, axis=-1, keepdims=True) - mu * mu, 0.0)
    y = (f - mu) * lax.rsqrt(var + eps) * g_ref[...] + be_ref[...] + x   # LN(ff) + x
    o_ref[...] = y.astype(o_ref.dtype)


def fused_ffn_ln(x, w1t, b1, w2t, b2, gamma, beta, *, tm=256):
    rows, E = x.shape
    F = w1t.shape[1]
    if rows <= tm:
        Mp, bm = rows, rows
    else:
        bm, Mp = tm, _round_up(rows, tm)
    xp = jnp.pad(x, ((0, Mp - rows), (0, 0))) if Mp != rows else x
    out = pl.pallas_call(
        functools.partial(_ffn_ln_kernel, eps=LN_EPS),
        out_shape=jax.ShapeDtypeStruct((Mp, E), x.dtype),
        grid=(Mp // bm,),
        in_specs=[pl.BlockSpec((bm, E), lambda i: (i, 0)),
                  pl.BlockSpec((E, F), lambda i: (0, 0)),
                  pl.BlockSpec((1, F), lambda i: (0, 0)),
                  pl.BlockSpec((F, E), lambda i: (0, 0)),
                  pl.BlockSpec((1, E), lambda i: (0, 0)),
                  pl.BlockSpec((1, E), lambda i: (0, 0)),
                  pl.BlockSpec((1, E), lambda i: (0, 0))],
        out_specs=pl.BlockSpec((bm, E), lambda i: (i, 0)),
        compiler_params=pltpu.CompilerParams(
            dimension_semantics=("parallel",),
            vmem_limit_bytes=VMEM_LIMIT_BYTES),
    )(xp, w1t, b1, w2t, b2, gamma, beta)
    return out[:rows] if Mp != rows else out


# ---------------------------------------------------------------------------
# Kernel 3: generic tiled linear (vocab projection)
# ---------------------------------------------------------------------------

def _linear_kernel(x_ref, w_ref, b_ref, o_ref, acc_ref, *, relu):
    @pl.when(pl.program_id(2) == 0)
    def _init():
        acc_ref[...] = jnp.zeros_like(acc_ref)

    md = MATMUL_INPUT_DTYPE
    acc_ref[...] += jnp.dot(x_ref[...].astype(md), w_ref[...].astype(md),
                            preferred_element_type=jnp.float32)

    @pl.when(pl.program_id(2) == pl.num_programs(2) - 1)
    def _finalize():
        y = acc_ref[...] + b_ref[...]
        if relu:
            y = jnp.maximum(y, 0.0)
        o_ref[...] = y.astype(o_ref.dtype)


def prep_linear_weights(w, b, *, tn=LIN_TN, tk=LIN_TK):
    """w: (dout, din) PyTorch layout -> pre-transposed, lane-padded, bf16."""
    dout, din = w.shape
    Kp = din if din <= tk else _round_up(din, tk)
    Np0 = _round_up(dout, 128)                   # lane-dense output stores
    Np = Np0 if Np0 <= tn else _round_up(dout, tn)
    wt = jnp.pad(w.T, ((0, Kp - din), (0, Np - dout))).astype(MATMUL_INPUT_DTYPE)
    bp = jnp.pad(b, (0, Np - dout)).reshape(1, Np).astype(jnp.float32)
    return wt, bp


def linear(x, wt_p, b_p, *, dout, relu=False, tm=LIN_TM, tn=LIN_TN, tk=LIN_TK):
    """x: (rows, din); wt_p: (Kp, Np) pre-transposed/padded; b_p: (1, Np)."""
    rows, din = x.shape
    Kp, Np = wt_p.shape
    if rows <= tm:
        Mp, bm = rows, rows
    else:
        bm, Mp = tm, _round_up(rows, tm)
    bk = Kp if Kp <= tk else tk
    bn = Np if Np <= tn else tn
    xp = x if (Mp == rows and Kp == din) else jnp.pad(x, ((0, Mp - rows), (0, Kp - din)))
    cost = pl.CostEstimate(flops=2 * Mp * Np * Kp, transcendentals=0,
                           bytes_accessed=4 * (Mp * Kp + Kp * Np + Mp * Np))
    out = pl.pallas_call(
        functools.partial(_linear_kernel, relu=relu),
        out_shape=jax.ShapeDtypeStruct((Mp, Np), x.dtype),
        grid=(Mp // bm, Np // bn, Kp // bk),
        in_specs=[pl.BlockSpec((bm, bk), lambda i, j, k: (i, k)),
                  pl.BlockSpec((bk, bn), lambda i, j, k: (k, j)),
                  pl.BlockSpec((1, bn), lambda i, j, k: (0, j))],
        out_specs=pl.BlockSpec((bm, bn), lambda i, j, k: (i, j)),
        scratch_shapes=[pltpu.VMEM((bm, bn), jnp.float32)],
        cost_estimate=cost,
        compiler_params=pltpu.CompilerParams(
            dimension_semantics=("parallel", "parallel", "arbitrary"),
            vmem_limit_bytes=VMEM_LIMIT_BYTES),
    )(xp, wt_p, b_p)
    return out[:rows, :dout]


# ---------------------------------------------------------------------------
# Model forward graph (dropout = 0 -> identity)
# ---------------------------------------------------------------------------

def transformer_block(value, key, query, key_valid, p, E, heads):
    N, Lq, _ = query.shape
    x = fused_attention_ln(value, key, query, key_valid, p["attn"],
                           p["ln1_g"], p["ln1_b"],
                           embed_size=E, heads=heads,
                           ln_of_sum=True, causal=False)                # LN(attn + q)
    out = fused_ffn_ln(x.reshape(N * Lq, E), p["w1t"], p["b1"],
                       p["w2t"], p["b2"], p["ln2_g"], p["ln2_b"])       # LN(ff) + x
    return out.reshape(N, Lq, E)


def decoder_block(x, value, key, src_key_valid, p, E, heads):
    q = fused_attention_ln(x, x, x, None, p["attn"], p["ln_g"], p["ln_b"],
                           embed_size=E, heads=heads,
                           ln_of_sum=False, causal=True)                # LN(attn) + x
    return transformer_block(value, key, q, src_key_valid, p["tblock"], E, heads)


def encoder_forward(src, src_key_valid, p, E, heads):
    Ls = src.shape[1]
    positions = jnp.arange(Ls)
    # TODO(synk): embedding gather kept in plain JAX (table lookup, not a dense hot path).
    x = jnp.take(p["word_emb"], src, axis=0) + jnp.take(p["pos_emb"], positions, axis=0)[None]
    for lp in p["layers"]:
        x = transformer_block(x, x, x, src_key_valid, lp, E, heads)
    return x


def decoder_forward(trg, enc_out, src_key_valid, p, E, heads, trg_vocab):
    N, Lt = trg.shape
    positions = jnp.arange(Lt)
    x = jnp.take(p["word_emb"], trg, axis=0) + jnp.take(p["pos_emb"], positions, axis=0)[None]
    for lp in p["layers"]:
        x = decoder_block(x, enc_out, enc_out, src_key_valid, lp, E, heads)
    logits = linear(x.reshape(N * Lt, E), p["fc_wt"], p["fc_b"], dout=trg_vocab)
    return logits.reshape(N, Lt, trg_vocab)


def transformer_forward(src, trg, params, *, src_pad_idx, E, heads, trg_vocab):
    N, Ls = src.shape
    # Compact key-validity vector (N, 1, Ls): no (N, Lq, Lk) mask ever hits HBM.
    # Decoder self-attention causal mask is built in-kernel from iota.
    src_key_valid = (src != src_pad_idx).astype(jnp.float32)[:, None, :]
    enc = encoder_forward(src, src_key_valid, params["encoder"], E, heads)
    return decoder_forward(trg, enc, src_key_valid, params["decoder"], E, heads, trg_vocab)


# ---------------------------------------------------------------------------
# Parameter init (PyTorch weight layout) + one-time kernel-layout preparation
# ---------------------------------------------------------------------------

def _norm(key, shape, scale=0.05):
    return (scale * jax.random.normal(key, shape)).astype(jnp.float32)


def init_attention(key, E, heads):
    D = E // heads
    ks = jax.random.split(key, 5)
    return {"wq": _norm(ks[0], (D, D)), "wk": _norm(ks[1], (D, D)),
            "wv": _norm(ks[2], (D, D)),
            "wo": _norm(ks[3], (E, E)), "bo": _norm(ks[4], (E,))}


def init_tblock(key, E, heads, fexp):
    ks = jax.random.split(key, 5)
    F = fexp * E
    return {"attn": init_attention(ks[0], E, heads),
            "ln1_g": jnp.ones((E,), jnp.float32), "ln1_b": jnp.zeros((E,), jnp.float32),
            "ln2_g": jnp.ones((E,), jnp.float32), "ln2_b": jnp.zeros((E,), jnp.float32),
            "w1": _norm(ks[1], (F, E)), "b1": _norm(ks[2], (F,)),
            "w2": _norm(ks[3], (E, F)), "b2": _norm(ks[4], (E,))}


def init_dblock(key, E, heads, fexp):
    ks = jax.random.split(key, 2)
    return {"attn": init_attention(ks[0], E, heads),
            "ln_g": jnp.ones((E,), jnp.float32), "ln_b": jnp.zeros((E,), jnp.float32),
            "tblock": init_tblock(ks[1], E, heads, fexp)}


def init_params(key, src_vocab, trg_vocab, E, num_layers, heads, fexp, max_length):
    ks = jax.random.split(key, 8)
    enc_layers = [init_tblock(k, E, heads, fexp)
                  for k in jax.random.split(ks[0], num_layers)]
    dec_layers = [init_dblock(k, E, heads, fexp)
                  for k in jax.random.split(ks[1], num_layers)]
    return {
        "encoder": {"word_emb": _norm(ks[2], (src_vocab, E), 0.1),
                    "pos_emb": _norm(ks[3], (max_length, E), 0.1),
                    "layers": enc_layers},
        "decoder": {"word_emb": _norm(ks[4], (trg_vocab, E), 0.1),
                    "pos_emb": _norm(ks[5], (max_length, E), 0.1),
                    "layers": dec_layers,
                    "fc_w": _norm(ks[6], (trg_vocab, E)),
                    "fc_b": _norm(ks[7], (trg_vocab,))},
    }


def prepare_params(params, *, E, heads):
    """One-time conversion to kernel layout: kron(I_H, W^T) block-diagonal
    projections, transposed/padded matmul weights (bf16), (1, D) biases / LN
    params.  Removes all per-forward weight-prep HBM traffic."""
    md = MATMUL_INPUT_DTYPE

    def vec(v):
        return v.reshape(1, -1).astype(jnp.float32)

    def prep_attn(a):
        eye = jnp.eye(heads, dtype=jnp.float32)
        return {"wq_bd": jnp.kron(eye, a["wq"].T).astype(md),
                "wk_bd": jnp.kron(eye, a["wk"].T).astype(md),
                "wv_bd": jnp.kron(eye, a["wv"].T).astype(md),
                "wo_t": a["wo"].T.astype(md),
                "bo": vec(a["bo"])}

    def prep_tblock(t):
        return {"attn": prep_attn(t["attn"]),
                "ln1_g": vec(t["ln1_g"]), "ln1_b": vec(t["ln1_b"]),
                "ln2_g": vec(t["ln2_g"]), "ln2_b": vec(t["ln2_b"]),
                "w1t": t["w1"].T.astype(md), "b1": vec(t["b1"]),
                "w2t": t["w2"].T.astype(md), "b2": vec(t["b2"])}

    def prep_dblock(d):
        return {"attn": prep_attn(d["attn"]),
                "ln_g": vec(d["ln_g"]), "ln_b": vec(d["ln_b"]),
                "tblock": prep_tblock(d["tblock"])}

    enc, dec = params["encoder"], params["decoder"]
    fc_wt, fc_b = prep_linear_weights(dec["fc_w"], dec["fc_b"])
    return {
        "encoder": {"word_emb": enc["word_emb"], "pos_emb": enc["pos_emb"],
                    "layers": [prep_tblock(l) for l in enc["layers"]]},
        "decoder": {"word_emb": dec["word_emb"], "pos_emb": dec["pos_emb"],
                    "layers": [prep_dblock(l) for l in dec["layers"]],
                    "fc_wt": fc_wt, "fc_b": fc_b},
    }


# ---------------------------------------------------------------------------
# Main
# ---------------------------------------------------------------------------

if __name__ == "__main__":
    SRC_VOCAB, TRG_VOCAB = 50, 50
    SRC_PAD, TRG_PAD = 0, 0
    E, HEADS, LAYERS, FEXP, MAXLEN = 32, 4, 2, 2, 16
    N, LS, LT = 2, 8, 8

    key = jax.random.PRNGKey(0)
    k_par, k_src, k_trg = jax.random.split(key, 3)
    raw_params = init_params(k_par, SRC_VOCAB, TRG_VOCAB, E, LAYERS, HEADS, FEXP, MAXLEN)
    params = prepare_params(raw_params, E=E, heads=HEADS)   # one-time kernel layout

    src = jax.random.randint(k_src, (N, LS), 1, SRC_VOCAB, dtype=jnp.int32)
    trg = jax.random.randint(k_trg, (N, LT), 1, TRG_VOCAB, dtype=jnp.int32)
    src = src.at[:, -2:].set(SRC_PAD)      # non-trivial key-padding mask

    fwd = jax.jit(functools.partial(transformer_forward,
                                    src_pad_idx=SRC_PAD, E=E, heads=HEADS,
                                    trg_vocab=TRG_VOCAB))
    out = jax.block_until_ready(fwd(src, trg, params))
    assert out.shape == (N, LT, TRG_VOCAB), out.shape
    assert bool(jnp.all(jnp.isfinite(out)))
    print("KERNEL_OK")
</pallas_src>

<mosaic_0001>
module attributes {stable_mosaic.version = 11 : i64} {
  func.func @_attn_ln_kernel_keys(%arg0: i32, %arg1: i32, %arg2: memref<1x1x8xf32, #tpu.memory_space<vmem>>, %arg3: memref<1x8x32xf32, #tpu.memory_space<vmem>>, %arg4: memref<1x8x32xf32, #tpu.memory_space<vmem>>, %arg5: memref<1x8x32xf32, #tpu.memory_space<vmem>>, %arg6: memref<32x32xbf16, #tpu.memory_space<vmem>>, %arg7: memref<32x32xbf16, #tpu.memory_space<vmem>>, %arg8: memref<32x32xbf16, #tpu.memory_space<vmem>>, %arg9: memref<32x32xbf16, #tpu.memory_space<vmem>>, %arg10: memref<1x32xf32, #tpu.memory_space<vmem>>, %arg11: memref<1x32xf32, #tpu.memory_space<vmem>>, %arg12: memref<1x32xf32, #tpu.memory_space<vmem>>, %arg13: memref<1x8x32xf32, #tpu.memory_space<vmem>>) attributes {dimension_semantics = [#tpu.dimension_semantics<parallel>, #tpu.dimension_semantics<parallel>], iteration_bounds = array<i64: 2, 1>, scalar_prefetch = 0 : i64, scratch_operands = 0 : i64, tpu.core_type = #tpu.core_type<tc>, window_params = [{transform_indices = @transform_0, window_bounds = array<i64: 1, 1, 8>}, {transform_indices = @transform_1, window_bounds = array<i64: 1, 8, 32>}, {transform_indices = @transform_2, window_bounds = array<i64: 1, 8, 32>}, {transform_indices = @transform_3, window_bounds = array<i64: 1, 8, 32>}, {pipeline_mode = #tpu.pipeline_mode<synchronous>, transform_indices = @transform_4, window_bounds = array<i64: 32, 32>}, {pipeline_mode = #tpu.pipeline_mode<synchronous>, transform_indices = @transform_5, window_bounds = array<i64: 32, 32>}, {pipeline_mode = #tpu.pipeline_mode<synchronous>, transform_indices = @transform_6, window_bounds = array<i64: 32, 32>}, {pipeline_mode = #tpu.pipeline_mode<synchronous>, transform_indices = @transform_7, window_bounds = array<i64: 32, 32>}, {pipeline_mode = #tpu.pipeline_mode<synchronous>, transform_indices = @transform_8, window_bounds = array<i64: 1, 32>}, {pipeline_mode = #tpu.pipeline_mode<synchronous>, transform_indices = @transform_9, window_bounds = array<i64: 1, 32>}, {pipeline_mode = #tpu.pipeline_mode<synchronous>, transform_indices = @transform_10, window_bounds = array<i64: 1, 32>}, {transform_indices = @transform_11, window_bounds = array<i64: 1, 8, 32>}]} {
    %c0 = arith.constant 0 : index
    %c0_0 = arith.constant 0 : index
    %c0_1 = arith.constant 0 : index
    %0 = vector.load %arg2[%c0, %c0_0, %c0_1] : memref<1x1x8xf32, #tpu.memory_space<vmem>>, vector<1x1x8xf32>
    %1 = vector.shape_cast %0 : vector<1x1x8xf32> to vector<1x8xf32>
    %cst = arith.constant 0.000000e+00 : f32
    %2 = vector.broadcast %cst : f32 to vector<1x8xf32>
    %3 = arith.cmpf oeq, %1, %2 : vector<1x8xf32>
    %c0_2 = arith.constant 0 : index
    %c0_3 = arith.constant 0 : index
    %c0_4 = arith.constant 0 : index
    %4 = vector.load %arg3[%c0_2, %c0_3, %c0_4] : memref<1x8x32xf32, #tpu.memory_space<vmem>>, vector<1x8x32xf32>
    %5 = vector.shape_cast %4 : vector<1x8x32xf32> to vector<8x32xf32>
    %c0_5 = arith.constant 0 : index
    %c0_6 = arith.constant 0 : index
    %c0_7 = arith.constant 0 : index
    %6 = vector.load %arg4[%c0_5, %c0_6, %c0_7] : memref<1x8x32xf32, #tpu.memory_space<vmem>>, vector<1x8x32xf32>
    %7 = vector.shape_cast %6 : vector<1x8x32xf32> to vector<8x32xf32>
    %c0_8 = arith.constant 0 : index
    %c0_9 = arith.constant 0 : index
    %c0_10 = arith.constant 0 : index
    %8 = vector.load %arg5[%c0_8, %c0_9, %c0_10] : memref<1x8x32xf32, #tpu.memory_space<vmem>>, vector<1x8x32xf32>
    %9 = vector.shape_cast %8 : vector<1x8x32xf32> to vector<8x32xf32>
    %c0_11 = arith.constant 0 : index
    %c0_12 = arith.constant 0 : index
    %10 = vector.load %arg6[%c0_11, %c0_12] : memref<32x32xbf16, #tpu.memory_space<vmem>>, vector<32x32xbf16>
    %c0_13 = arith.constant 0 : index
    %c0_14 = arith.constant 0 : index
    %11 = vector.load %arg7[%c0_13, %c0_14] : memref<32x32xbf16, #tpu.memory_space<vmem>>, vector<32x32xbf16>
    %c0_15 = arith.constant 0 : index
    %c0_16 = arith.constant 0 : index
    %12 = vector.load %arg8[%c0_15, %c0_16] : memref<32x32xbf16, #tpu.memory_space<vmem>>, vector<32x32xbf16>
    %c0_17 = arith.constant 0 : index
    %c0_18 = arith.constant 0 : index
    %13 = vector.load %arg9[%c0_17, %c0_18] : memref<32x32xbf16, #tpu.memory_space<vmem>>, vector<32x32xbf16>
    %c0_19 = arith.constant 0 : index
    %c0_20 = arith.constant 0 : index
    %14 = vector.load %arg10[%c0_19, %c0_20] : memref<1x32xf32, #tpu.memory_space<vmem>>, vector<1x32xf32>
    %c0_21 = arith.constant 0 : index
    %c0_22 = arith.constant 0 : index
    %15 = vector.load %arg11[%c0_21, %c0_22] : memref<1x32xf32, #tpu.memory_space<vmem>>, vector<1x32xf32>
    %c0_23 = arith.constant 0 : index
    %c0_24 = arith.constant 0 : index
    %16 = vector.load %arg12[%c0_23, %c0_24] : memref<1x32xf32, #tpu.memory_space<vmem>>, vector<1x32xf32>
    %17 = arith.truncf %5 : vector<8x32xf32> to vector<8x32xbf16>
    %cst_25 = arith.constant dense<0.000000e+00> : vector<8x32xf32>
    %18 = tpu.matmul %17, %10, %cst_25 {dimension_numbers = #tpu.dot_dimension_numbers<[1], [0], [0], [1], [0, 0, 1, 1], [], []>} : vector<8x32xbf16>, vector<32x32xbf16>, vector<8x32xf32> -> vector<8x32xf32>
    %19 = arith.truncf %18 : vector<8x32xf32> to vector<8x32xbf16>
    %20 = arith.truncf %7 : vector<8x32xf32> to vector<8x32xbf16>
    %cst_26 = arith.constant dense<0.000000e+00> : vector<8x32xf32>
    %21 = tpu.matmul %20, %11, %cst_26 {dimension_numbers = #tpu.dot_dimension_numbers<[1], [0], [0], [1], [0, 0, 1, 1], [], []>} : vector<8x32xbf16>, vector<32x32xbf16>, vector<8x32xf32> -> vector<8x32xf32>
    %22 = arith.truncf %21 : vector<8x32xf32> to vector<8x32xbf16>
    %23 = arith.truncf %9 : vector<8x32xf32> to vector<8x32xbf16>
    %cst_27 = arith.constant dense<0.000000e+00> : vector<8x32xf32>
    %24 = tpu.matmul %23, %12, %cst_27 {dimension_numbers = #tpu.dot_dimension_numbers<[1], [0], [0], [1], [0, 0, 1, 1], [], []>} : vector<8x32xbf16>, vector<32x32xbf16>, vector<8x32xf32> -> vector<8x32xf32>
    %25 = arith.truncf %24 : vector<8x32xf32> to vector<8x32xbf16>
    %26 = vector.extract_strided_slice %19 {offsets = [0, 0], sizes = [8, 8], strides = [1, 1]} : vector<8x32xbf16> to vector<8x8xbf16>
    %27 = vector.extract_strided_slice %22 {offsets = [0, 0], sizes = [8, 8], strides = [1, 1]} : vector<8x32xbf16> to vector<8x8xbf16>
    %cst_28 = arith.constant dense<0.000000e+00> : vector<8x8xf32>
    %28 = tpu.matmul %26, %27, %cst_28 {dimension_numbers = #tpu.dot_dimension_numbers<[1], [1], [0], [0], [0, 0, 1, 0], [], []>} : vector<8x8xbf16>, vector<8x8xbf16>, vector<8x8xf32> -> vector<8x8xf32>
    %cst_29 = arith.constant -1.000000e+20 : f32
    %29 = vector.shape_cast %3 : vector<1x8xi1> to vector<1x8xi1>
    %30 = vector.broadcast %29 : vector<1x8xi1> to vector<8x8xi1>
    %31 = vector.broadcast %cst_29 : f32 to vector<8x8xf32>
    %32 = arith.select %30, %31, %28 : vector<8x8xi1>, vector<8x8xf32>
    %cst_30 = arith.constant 0.176776692 : f32
    %33 = vector.broadcast %cst_30 : f32 to vector<8x8xf32>
    %34 = arith.mulf %32, %33 : vector<8x8xf32>
    %cst_31 = arith.constant dense<0xFF800000> : vector<8xf32>
    %35 = vector.multi_reduction <maximumf>, %34, %cst_31 [1] : vector<8x8xf32> to vector<8xf32>
    %36 = vector.shape_cast %35 : vector<8xf32> to vector<8x1xf32>
    %37 = vector.broadcast %36 : vector<8x1xf32> to vector<8x8xf32>
    %38 = arith.subf %34, %37 : vector<8x8xf32>
    %39 = math.exp %38 : vector<8x8xf32>
    %cst_32 = arith.constant dense<0.000000e+00> : vector<8xf32>
    %40 = vector.multi_reduction <add>, %39, %cst_32 [1] : vector<8x8xf32> to vector<8xf32>
    %41 = vector.shape_cast %40 : vector<8xf32> to vector<8x1xf32>
    %42 = tpu.reciprocal %41 {approx = true} : vector<8x1xf32> -> vector<8x1xf32>
    %43 = vector.broadcast %42 : vector<8x1xf32> to vector<8x8xf32>
    %44 = arith.mulf %39, %43 : vector<8x8xf32>
    %45 = arith.truncf %44 : vector<8x8xf32> to vector<8x8xbf16>
    %46 = vector.extract_strided_slice %25 {offsets = [0, 0], sizes = [8, 8], strides = [1, 1]} : vector<8x32xbf16> to vector<8x8xbf16>
    %cst_33 = arith.constant dense<0.000000e+00> : vector<8x8xf32>
    %47 = tpu.matmul %45, %46, %cst_33 {dimension_numbers = #tpu.dot_dimension_numbers<[1], [0], [0], [1], [0, 0, 1, 1], [], []>} : vector<8x8xbf16>, vector<8x8xbf16>, vector<8x8xf32> -> vector<8x8xf32>
    %48 = vector.extract_strided_slice %19 {offsets = [0, 8], sizes = [8, 8], strides = [1, 1]} : vector<8x32xbf16> to vector<8x8xbf16>
    %49 = vector.extract_strided_slice %22 {offsets = [0, 8], sizes = [8, 8], strides = [1, 1]} : vector<8x32xbf16> to vector<8x8xbf16>
    %cst_34 = arith.constant dense<0.000000e+00> : vector<8x8xf32>
    %50 = tpu.matmul %48, %49, %cst_34 {dimension_numbers = #tpu.dot_dimension_numbers<[1], [1], [0], [0], [0, 0, 1, 0], [], []>} : vector<8x8xbf16>, vector<8x8xbf16>, vector<8x8xf32> -> vector<8x8xf32>
    %cst_35 = arith.constant -1.000000e+20 : f32
    %51 = vector.shape_cast %3 : vector<1x8xi1> to vector<1x8xi1>
    %52 = vector.broadcast %51 : vector<1x8xi1> to vector<8x8xi1>
    %53 = vector.broadcast %cst_35 : f32 to vector<8x8xf32>
    %54 = arith.select %52, %53, %50 : vector<8x8xi1>, vector<8x8xf32>
    %cst_36 = arith.constant 0.176776692 : f32
    %55 = vector.broadcast %cst_36 : f32 to vector<8x8xf32>
    %56 = arith.mulf %54, %55 : vector<8x8xf32>
    %cst_37 = arith.constant dense<0xFF800000> : vector<8xf32>
    %57 = vector.multi_reduction <maximumf>, %56, %cst_37 [1] : vector<8x8xf32> to vector<8xf32>
    %58 = vector.shape_cast %57 : vector<8xf32> to vector<8x1xf32>
    %59 = vector.broadcast %58 : vector<8x1xf32> to vector<8x8xf32>
    %60 = arith.subf %56, %59 : vector<8x8xf32>
    %61 = math.exp %60 : vector<8x8xf32>
    %cst_38 = arith.constant dense<0.000000e+00> : vector<8xf32>
    %62 = vector.multi_reduction <add>, %61, %cst_38 [1] : vector<8x8xf32> to vector<8xf32>
    %63 = vector.shape_cast %62 : vector<8xf32> to vector<8x1xf32>
    %64 = tpu.reciprocal %63 {approx = true} : vector<8x1xf32> -> vector<8x1xf32>
    %65 = vector.broadcast %64 : vector<8x1xf32> to vector<8x8xf32>
    %66 = arith.mulf %61, %65 : vector<8x8xf32>
    %67 = arith.truncf %66 : vector<8x8xf32> to vector<8x8xbf16>
    %68 = vector.extract_strided_slice %25 {offsets = [0, 8], sizes = [8, 8], strides = [1, 1]} : vector<8x32xbf16> to vector<8x8xbf16>
    %cst_39 = arith.constant dense<0.000000e+00> : vector<8x8xf32>
    %69 = tpu.matmul %67, %68, %cst_39 {dimension_numbers = #tpu.dot_dimension_numbers<[1], [0], [0], [1], [0, 0, 1, 1], [], []>} : vector<8x8xbf16>, vector<8x8xbf16>, vector<8x8xf32> -> vector<8x8xf32>
    %70 = vector.extract_strided_slice %19 {offsets = [0, 16], sizes = [8, 8], strides = [1, 1]} : vector<8x32xbf16> to vector<8x8xbf16>
    %71 = vector.extract_strided_slice %22 {offsets = [0, 16], sizes = [8, 8], strides = [1, 1]} : vector<8x32xbf16> to vector<8x8xbf16>
    %cst_40 = arith.constant dense<0.000000e+00> : vector<8x8xf32>
    %72 = tpu.matmul %70, %71, %cst_40 {dimension_numbers = #tpu.dot_dimension_numbers<[1], [1], [0], [0], [0, 0, 1, 0], [], []>} : vector<8x8xbf16>, vector<8x8xbf16>, vector<8x8xf32> -> vector<8x8xf32>
    %cst_41 = arith.constant -1.000000e+20 : f32
    %73 = vector.shape_cast %3 : vector<1x8xi1> to vector<1x8xi1>
    %74 = vector.broadcast %73 : vector<1x8xi1> to vector<8x8xi1>
    %75 = vector.broadcast %cst_41 : f32 to vector<8x8xf32>
    %76 = arith.select %74, %75, %72 : vector<8x8xi1>, vector<8x8xf32>
    %cst_42 = arith.constant 0.176776692 : f32
    %77 = vector.broadcast %cst_42 : f32 to vector<8x8xf32>
    %78 = arith.mulf %76, %77 : vector<8x8xf32>
    %cst_43 = arith.constant dense<0xFF800000> : vector<8xf32>
    %79 = vector.multi_reduction <maximumf>, %78, %cst_43 [1] : vector<8x8xf32> to vector<8xf32>
    %80 = vector.shape_cast %79 : vector<8xf32> to vector<8x1xf32>
    %81 = vector.broadcast %80 : vector<8x1xf32> to vector<8x8xf32>
    %82 = arith.subf %78, %81 : vector<8x8xf32>
    %83 = math.exp %82 : vector<8x8xf32>
    %cst_44 = arith.constant dense<0.000000e+00> : vector<8xf32>
    %84 = vector.multi_reduction <add>, %83, %cst_44 [1] : vector<8x8xf32> to vector<8xf32>
    %85 = vector.shape_cast %84 : vector<8xf32> to vector<8x1xf32>
    %86 = tpu.reciprocal %85 {approx = true} : vector<8x1xf32> -> vector<8x1xf32>
    %87 = vector.broadcast %86 : vector<8x1xf32> to vector<8x8xf32>
    %88 = arith.mulf %83, %87 : vector<8x8xf32>
    %89 = arith.truncf %88 : vector<8x8xf32> to vector<8x8xbf16>
    %90 = vector.extract_strided_slice %25 {offsets = [0, 16], sizes = [8, 8], strides = [1, 1]} : vector<8x32xbf16> to vector<8x8xbf16>
    %cst_45 = arith.constant dense<0.000000e+00> : vector<8x8xf32>
    %91 = tpu.matmul %89, %90, %cst_45 {dimension_numbers = #tpu.dot_dimension_numbers<[1], [0], [0], [1], [0, 0, 1, 1], [], []>} : vector<8x8xbf16>, vector<8x8xbf16>, vector<8x8xf32> -> vector<8x8xf32>
    %92 = vector.extract_strided_slice %19 {offsets = [0, 24], sizes = [8, 8], strides = [1, 1]} : vector<8x32xbf16> to vector<8x8xbf16>
    %93 = vector.extract_strided_slice %22 {offsets = [0, 24], sizes = [8, 8], strides = [1, 1]} : vector<8x32xbf16> to vector<8x8xbf16>
    %cst_46 = arith.constant dense<0.000000e+00> : vector<8x8xf32>
    %94 = tpu.matmul %92, %93, %cst_46 {dimension_numbers = #tpu.dot_dimension_numbers<[1], [1], [0], [0], [0, 0, 1, 0], [], []>} : vector<8x8xbf16>, vector<8x8xbf16>, vector<8x8xf32> -> vector<8x8xf32>
    %cst_47 = arith.constant -1.000000e+20 : f32
    %95 = vector.shape_cast %3 : vector<1x8xi1> to vector<1x8xi1>
    %96 = vector.broadcast %95 : vector<1x8xi1> to vector<8x8xi1>
    %97 = vector.broadcast %cst_47 : f32 to vector<8x8xf32>
    %98 = arith.select %96, %97, %94 : vector<8x8xi1>, vector<8x8xf32>
    %cst_48 = arith.constant 0.176776692 : f32
    %99 = vector.broadcast %cst_48 : f32 to vector<8x8xf32>
    %100 = arith.mulf %98, %99 : vector<8x8xf32>
    %cst_49 = arith.constant dense<0xFF800000> : vector<8xf32>
    %101 = vector.multi_reduction <maximumf>, %100, %cst_49 [1] : vector<8x8xf32> to vector<8xf32>
    %102 = vector.shape_cast %101 : vector<8xf32> to vector<8x1xf32>
    %103 = vector.broadcast %102 : vector<8x1xf32> to vector<8x8xf32>
    %104 = arith.subf %100, %103 : vector<8x8xf32>
    %105 = math.exp %104 : vector<8x8xf32>
    %cst_50 = arith.constant dense<0.000000e+00> : vector<8xf32>
    %106 = vector.multi_reduction <add>, %105, %cst_50 [1] : vector<8x8xf32> to vector<8xf32>
    %107 = vector.shape_cast %106 : vector<8xf32> to vector<8x1xf32>
    %108 = tpu.reciprocal %107 {approx = true} : vector<8x1xf32> -> vector<8x1xf32>
    %109 = vector.broadcast %108 : vector<8x1xf32> to vector<8x8xf32>
    %110 = arith.mulf %105, %109 : vector<8x8xf32>
    %111 = arith.truncf %110 : vector<8x8xf32> to vector<8x8xbf16>
    %112 = vector.extract_strided_slice %25 {offsets = [0, 24], sizes = [8, 8], strides = [1, 1]} : vector<8x32xbf16> to vector<8x8xbf16>
    %cst_51 = arith.constant dense<0.000000e+00> : vector<8x8xf32>
    %113 = tpu.matmul %111, %112, %cst_51 {dimension_numbers = #tpu.dot_dimension_numbers<[1], [0], [0], [1], [0, 0, 1, 1], [], []>} : vector<8x8xbf16>, vector<8x8xbf16>, vector<8x8xf32> -> vector<8x8xf32>
    %114 = tpu.concatenate %47, %69, %91, %113 in 1 : vector<8x8xf32>, vector<8x8xf32>, vector<8x8xf32>, vector<8x8xf32> -> vector<8x32xf32>
    %115 = arith.truncf %114 : vector<8x32xf32> to vector<8x32xbf16>
    %cst_52 = arith.constant dense<0.000000e+00> : vector<8x32xf32>
    %116 = tpu.matmul %115, %13, %cst_52 {dimension_numbers = #tpu.dot_dimension_numbers<[1], [0], [0], [1], [0, 0, 1, 1], [], []>} : vector<8x32xbf16>, vector<32x32xbf16>, vector<8x32xf32> -> vector<8x32xf32>
    %117 = vector.broadcast %14 : vector<1x32xf32> to vector<8x32xf32>
    %118 = arith.addf %116, %117 : vector<8x32xf32>
    %119 = arith.addf %118, %5 : vector<8x32xf32>
    %cst_53 = arith.constant dense<0.000000e+00> : vector<8xf32>
    %120 = vector.multi_reduction <add>, %119, %cst_53 [1] : vector<8x32xf32> to vector<8xf32>
    %121 = vector.shape_cast %120 : vector<8xf32> to vector<8x1xf32>
    %cst_54 = arith.constant 3.200000e+01 : f32
    %122 = vector.broadcast %cst_54 : f32 to vector<8x1xf32>
    %123 = arith.divf %121, %122 : vector<8x1xf32>
    %124 = arith.mulf %119, %119 : vector<8x32xf32>
    %cst_55 = arith.constant dense<0.000000e+00> : vector<8xf32>
    %125 = vector.multi_reduction <add>, %124, %cst_55 [1] : vector<8x32xf32> to vector<8xf32>
    %126 = vector.shape_cast %125 : vector<8xf32> to vector<8x1xf32>
    %cst_56 = arith.constant 3.200000e+01 : f32
    %127 = vector.broadcast %cst_56 : f32 to vector<8x1xf32>
    %128 = arith.divf %126, %127 : vector<8x1xf32>
    %129 = arith.mulf %123, %123 : vector<8x1xf32>
    %130 = arith.subf %128, %129 : vector<8x1xf32>
    %cst_57 = arith.constant 0.000000e+00 : f32
    %131 = vector.broadcast %cst_57 : f32 to vector<8x1xf32>
    %132 = arith.maximumf %130, %131 : vector<8x1xf32>
    %133 = vector.broadcast %123 : vector<8x1xf32> to vector<8x32xf32>
    %134 = arith.subf %119, %133 : vector<8x32xf32>
    %cst_58 = arith.constant 9.99999974E-6 : f32
    %135 = vector.broadcast %cst_58 : f32 to vector<8x1xf32>
    %136 = arith.addf %132, %135 : vector<8x1xf32>
    %137 = math.rsqrt %136 : vector<8x1xf32>
    %138 = vector.broadcast %137 : vector<8x1xf32> to vector<8x32xf32>
    %139 = arith.mulf %134, %138 : vector<8x32xf32>
    %140 = vector.broadcast %15 : vector<1x32xf32> to vector<8x32xf32>
    %141 = arith.mulf %139, %140 : vector<8x32xf32>
    %142 = vector.broadcast %16 : vector<1x32xf32> to vector<8x32xf32>
    %143 = arith.addf %141, %142 : vector<8x32xf32>
    %c0_59 = arith.constant 0 : index
    %c0_60 = arith.constant 0 : index
    %c0_61 = arith.constant 0 : index
    %144 = vector.load %arg13[%c0_59, %c0_60, %c0_61] : memref<1x8x32xf32, #tpu.memory_space<vmem>>, vector<1x8x32xf32>
    %145 = vector.shape_cast %144 : vector<1x8x32xf32> to vector<8x32xf32>
    %146 = vector.shape_cast %143 : vector<8x32xf32> to vector<1x8x32xf32>
    tpu.vector_store %arg13[%c0_59, %c0_60, %c0_61], %146 {strides = array<i32>} : memref<1x8x32xf32, #tpu.memory_space<vmem>>, vector<1x8x32xf32>,
    return
  }
  func.func @transform_0(%arg0: i32, %arg1: i32) -> (i32, i32, i32) {
    %c0_i32 = arith.constant 0 : i32
    %c0_i32_0 = arith.constant 0 : i32
    %c0_i32_1 = arith.constant 0 : i32
    return %arg0, %c0_i32, %c0_i32_0 : i32, i32, i32
  }
  func.func @transform_1(%arg0: i32, %arg1: i32) -> (i32, i32, i32) {
    %c0_i32 = arith.constant 0 : i32
    %c0_i32_0 = arith.constant 0 : i32
    return %arg0, %arg1, %c0_i32 : i32, i32, i32
  }
  func.func @transform_2(%arg0: i32, %arg1: i32) -> (i32, i32, i32) {
    %c0_i32 = arith.constant 0 : i32
    %c0_i32_0 = arith.constant 0 : i32
    %c0_i32_1 = arith.constant 0 : i32
    return %arg0, %c0_i32, %c0_i32_0 : i32, i32, i32
  }
  func.func @transform_3(%arg0: i32, %arg1: i32) -> (i32, i32, i32) {
    %c0_i32 = arith.constant 0 : i32
    %c0_i32_0 = arith.constant 0 : i32
    %c0_i32_1 = arith.constant 0 : i32
    return %arg0, %c0_i32, %c0_i32_0 : i32, i32, i32
  }
  func.func @transform_4(%arg0: i32, %arg1: i32) -> (i32, i32) {
    %c0_i32 = arith.constant 0 : i32
    %c0_i32_0 = arith.constant 0 : i32
    %c0_i32_1 = arith.constant 0 : i32
    return %c0_i32, %c0_i32_0 : i32, i32
  }
  func.func @transform_5(%arg0: i32, %arg1: i32) -> (i32, i32) {
    %c0_i32 = arith.constant 0 : i32
    %c0_i32_0 = arith.constant 0 : i32
    %c0_i32_1 = arith.constant 0 : i32
    return %c0_i32, %c0_i32_0 : i32, i32
  }
  func.func @transform_6(%arg0: i32, %arg1: i32) -> (i32, i32) {
    %c0_i32 = arith.constant 0 : i32
    %c0_i32_0 = arith.constant 0 : i32
    %c0_i32_1 = arith.constant 0 : i32
    return %c0_i32, %c0_i32_0 : i32, i32
  }
  func.func @transform_7(%arg0: i32, %arg1: i32) -> (i32, i32) {
    %c0_i32 = arith.constant 0 : i32
    %c0_i32_0 = arith.constant 0 : i32
    %c0_i32_1 = arith.constant 0 : i32
    return %c0_i32, %c0_i32_0 : i32, i32
  }
  func.func @transform_8(%arg0: i32, %arg1: i32) -> (i32, i32) {
    %c0_i32 = arith.constant 0 : i32
    %c0_i32_0 = arith.constant 0 : i32
    %c0_i32_1 = arith.constant 0 : i32
    return %c0_i32, %c0_i32_0 : i32, i32
  }
  func.func @transform_9(%arg0: i32, %arg1: i32) -> (i32, i32) {
    %c0_i32 = arith.constant 0 : i32
    %c0_i32_0 = arith.constant 0 : i32
    %c0_i32_1 = arith.constant 0 : i32
    return %c0_i32, %c0_i32_0 : i32, i32
  }
  func.func @transform_10(%arg0: i32, %arg1: i32) -> (i32, i32) {
    %c0_i32 = arith.constant 0 : i32
    %c0_i32_0 = arith.constant 0 : i32
    %c0_i32_1 = arith.constant 0 : i32
    return %c0_i32, %c0_i32_0 : i32, i32
  }
  func.func @transform_11(%arg0: i32, %arg1: i32) -> (i32, i32, i32) {
    %c0_i32 = arith.constant 0 : i32
    %c0_i32_0 = arith.constant 0 : i32
    return %arg0, %arg1, %c0_i32 : i32, i32, i32
  }
}

module attributes {stable_mosaic.version = 11 : i64} {
  func.func @_ffn_ln_kernel(%arg0: i32, %arg1: memref<16x32xf32, #tpu.memory_space<vmem>>, %arg2: memref<32x64xbf16, #tpu.memory_space<vmem>>, %arg3: memref<1x64xf32, #tpu.memory_space<vmem>>, %arg4: memref<64x32xbf16, #tpu.memory_space<vmem>>, %arg5: memref<1x32xf32, #tpu.memory_space<vmem>>, %arg6: memref<1x32xf32, #tpu.memory_space<vmem>>, %arg7: memref<1x32xf32, #tpu.memory_space<vmem>>, %arg8: memref<16x32xf32, #tpu.memory_space<vmem>>) attributes {dimension_semantics = [#tpu.dimension_semantics<parallel>], iteration_bounds = array<i64: 1>, scalar_prefetch = 0 : i64, scratch_operands = 0 : i64, tpu.core_type = #tpu.core_type<tc>, window_params = [{transform_indices = @transform_0, window_bounds = array<i64: 16, 32>}, {pipeline_mode = #tpu.pipeline_mode<synchronous>, transform_indices = @transform_1, window_bounds = array<i64: 32, 64>}, {pipeline_mode = #tpu.pipeline_mode<synchronous>, transform_indices = @transform_2, window_bounds = array<i64: 1, 64>}, {pipeline_mode = #tpu.pipeline_mode<synchronous>, transform_indices = @transform_3, window_bounds = array<i64: 64, 32>}, {pipeline_mode = #tpu.pipeline_mode<synchronous>, transform_indices = @transform_4, window_bounds = array<i64: 1, 32>}, {pipeline_mode = #tpu.pipeline_mode<synchronous>, transform_indices = @transform_5, window_bounds = array<i64: 1, 32>}, {pipeline_mode = #tpu.pipeline_mode<synchronous>, transform_indices = @transform_6, window_bounds = array<i64: 1, 32>}, {transform_indices = @transform_7, window_bounds = array<i64: 16, 32>}]} {
    %c0 = arith.constant 0 : index
    %c0_0 = arith.constant 0 : index
    %0 = vector.load %arg1[%c0, %c0_0] : memref<16x32xf32, #tpu.memory_space<vmem>>, vector<16x32xf32>
    %1 = arith.truncf %0 : vector<16x32xf32> to vector<16x32xbf16>
    %c0_1 = arith.constant 0 : index
    %c0_2 = arith.constant 0 : index
    %2 = vector.load %arg2[%c0_1, %c0_2] : memref<32x64xbf16, #tpu.memory_space<vmem>>, vector<32x64xbf16>
    %cst = arith.constant dense<0.000000e+00> : vector<16x64xf32>
    %3 = tpu.matmul %1, %2, %cst {dimension_numbers = #tpu.dot_dimension_numbers<[1], [0], [0], [1], [0, 0, 1, 1], [], []>} : vector<16x32xbf16>, vector<32x64xbf16>, vector<16x64xf32> -> vector<16x64xf32>
    %c0_3 = arith.constant 0 : index
    %c0_4 = arith.constant 0 : index
    %4 = vector.load %arg3[%c0_3, %c0_4] : memref<1x64xf32, #tpu.memory_space<vmem>>, vector<1x64xf32>
    %5 = vector.broadcast %4 : vector<1x64xf32> to vector<16x64xf32>
    %6 = arith.addf %3, %5 : vector<16x64xf32>
    %cst_5 = arith.constant 0.000000e+00 : f32
    %7 = vector.broadcast %cst_5 : f32 to vector<16x64xf32>
    %8 = arith.maximumf %6, %7 : vector<16x64xf32>
    %9 = arith.truncf %8 : vector<16x64xf32> to vector<16x64xbf16>
    %c0_6 = arith.constant 0 : index
    %c0_7 = arith.constant 0 : index
    %10 = vector.load %arg4[%c0_6, %c0_7] : memref<64x32xbf16, #tpu.memory_space<vmem>>, vector<64x32xbf16>
    %cst_8 = arith.constant dense<0.000000e+00> : vector<16x32xf32>
    %11 = tpu.matmul %9, %10, %cst_8 {dimension_numbers = #tpu.dot_dimension_numbers<[1], [0], [0], [1], [0, 0, 1, 1], [], []>} : vector<16x64xbf16>, vector<64x32xbf16>, vector<16x32xf32> -> vector<16x32xf32>
    %c0_9 = arith.constant 0 : index
    %c0_10 = arith.constant 0 : index
    %12 = vector.load %arg5[%c0_9, %c0_10] : memref<1x32xf32, #tpu.memory_space<vmem>>, vector<1x32xf32>
    %13 = vector.broadcast %12 : vector<1x32xf32> to vector<16x32xf32>
    %14 = arith.addf %11, %13 : vector<16x32xf32>
    %cst_11 = arith.constant dense<0.000000e+00> : vector<16xf32>
    %15 = vector.multi_reduction <add>, %14, %cst_11 [1] : vector<16x32xf32> to vector<16xf32>
    %16 = vector.shape_cast %15 : vector<16xf32> to vector<16x1xf32>
    %cst_12 = arith.constant 3.200000e+01 : f32
    %17 = vector.broadcast %cst_12 : f32 to vector<16x1xf32>
    %18 = arith.divf %16, %17 : vector<16x1xf32>
    %19 = arith.mulf %14, %14 : vector<16x32xf32>
    %cst_13 = arith.constant dense<0.000000e+00> : vector<16xf32>
    %20 = vector.multi_reduction <add>, %19, %cst_13 [1] : vector<16x32xf32> to vector<16xf32>
    %21 = vector.shape_cast %20 : vector<16xf32> to vector<16x1xf32>
    %cst_14 = arith.constant 3.200000e+01 : f32
    %22 = vector.broadcast %cst_14 : f32 to vector<16x1xf32>
    %23 = arith.divf %21, %22 : vector<16x1xf32>
    %24 = arith.mulf %18, %18 : vector<16x1xf32>
    %25 = arith.subf %23, %24 : vector<16x1xf32>
    %cst_15 = arith.constant 0.000000e+00 : f32
    %26 = vector.broadcast %cst_15 : f32 to vector<16x1xf32>
    %27 = arith.maximumf %25, %26 : vector<16x1xf32>
    %28 = vector.broadcast %18 : vector<16x1xf32> to vector<16x32xf32>
    %29 = arith.subf %14, %28 : vector<16x32xf32>
    %cst_16 = arith.constant 9.99999974E-6 : f32
    %30 = vector.broadcast %cst_16 : f32 to vector<16x1xf32>
    %31 = arith.addf %27, %30 : vector<16x1xf32>
    %32 = math.rsqrt %31 : vector<16x1xf32>
    %33 = vector.broadcast %32 : vector<16x1xf32> to vector<16x32xf32>
    %34 = arith.mulf %29, %33 : vector<16x32xf32>
    %c0_17 = arith.constant 0 : index
    %c0_18 = arith.constant 0 : index
    %35 = vector.load %arg6[%c0_17, %c0_18] : memref<1x32xf32, #tpu.memory_space<vmem>>, vector<1x32xf32>
    %36 = vector.broadcast %35 : vector<1x32xf32> to vector<16x32xf32>
    %37 = arith.mulf %34, %36 : vector<16x32xf32>
    %c0_19 = arith.constant 0 : index
    %c0_20 = arith.constant 0 : index
    %38 = vector.load %arg7[%c0_19, %c0_20] : memref<1x32xf32, #tpu.memory_space<vmem>>, vector<1x32xf32>
    %39 = vector.broadcast %38 : vector<1x32xf32> to vector<16x32xf32>
    %40 = arith.addf %37, %39 : vector<16x32xf32>
    %41 = arith.addf %40, %0 : vector<16x32xf32>
    %c0_21 = arith.constant 0 : index
    %c0_22 = arith.constant 0 : index
    %42 = vector.load %arg8[%c0_21, %c0_22] : memref<16x32xf32, #tpu.memory_space<vmem>>, vector<16x32xf32>
    tpu.vector_store %arg8[%c0_21, %c0_22], %41 {strides = array<i32>} : memref<16x32xf32, #tpu.memory_space<vmem>>, vector<16x32xf32>,
    return
  }
  func.func @transform_0(%arg0: i32) -> (i32, i32) {
    %c0_i32 = arith.constant 0 : i32
    %c0_i32_0 = arith.constant 0 : i32
    return %arg0, %c0_i32 : i32, i32
  }
  func.func @transform_1(%arg0: i32) -> (i32, i32) {
    %c0_i32 = arith.constant 0 : i32
    %c0_i32_0 = arith.constant 0 : i32
    %c0_i32_1 = arith.constant 0 : i32
    return %c0_i32, %c0_i32_0 : i32, i32
  }
  func.func @transform_2(%arg0: i32) -> (i32, i32) {
    %c0_i32 = arith.constant 0 : i32
    %c0_i32_0 = arith.constant 0 : i32
    %c0_i32_1 = arith.constant 0 : i32
    return %c0_i32, %c0_i32_0 : i32, i32
  }
  func.func @transform_3(%arg0: i32) -> (i32, i32) {
    %c0_i32 = arith.constant 0 : i32
    %c0_i32_0 = arith.constant 0 : i32
    %c0_i32_1 = arith.constant 0 : i32
    return %c0_i32, %c0_i32_0 : i32, i32
  }
  func.func @transform_4(%arg0: i32) -> (i32, i32) {
    %c0_i32 = arith.constant 0 : i32
    %c0_i32_0 = arith.constant 0 : i32
    %c0_i32_1 = arith.constant 0 : i32
    return %c0_i32, %c0_i32_0 : i32, i32
  }
  func.func @transform_5(%arg0: i32) -> (i32, i32) {
    %c0_i32 = arith.constant 0 : i32
    %c0_i32_0 = arith.constant 0 : i32
    %c0_i32_1 = arith.constant 0 : i32
    return %c0_i32, %c0_i32_0 : i32, i32
  }
  func.func @transform_6(%arg0: i32) -> (i32, i32) {
    %c0_i32 = arith.constant 0 : i32
    %c0_i32_0 = arith.constant 0 : i32
    %c0_i32_1 = arith.constant 0 : i32
    return %c0_i32, %c0_i32_0 : i32, i32
  }
  func.func @transform_7(%arg0: i32) -> (i32, i32) {
    %c0_i32 = arith.constant 0 : i32
    %c0_i32_0 = arith.constant 0 : i32
    return %arg0, %c0_i32 : i32, i32
  }
}

module attributes {stable_mosaic.version = 11 : i64} {
  func.func @_linear_kernel(%arg0: i32, %arg1: i32, %arg2: i32, %arg3: memref<16x32xf32, #tpu.memory_space<vmem>>, %arg4: memref<32x128xbf16, #tpu.memory_space<vmem>>, %arg5: memref<1x128xf32, #tpu.memory_space<vmem>>, %arg6: memref<16x128xf32, #tpu.memory_space<vmem>>, %arg7: memref<16x128xf32, #tpu.memory_space<vmem>>) attributes {dimension_semantics = [#tpu.dimension_semantics<parallel>, #tpu.dimension_semantics<parallel>, #tpu.dimension_semantics<arbitrary>], iteration_bounds = array<i64: 1, 1, 1>, scalar_prefetch = 0 : i64, scratch_operands = 1 : i64, tpu.core_type = #tpu.core_type<tc>, window_params = [{transform_indices = @transform_0, window_bounds = array<i64: 16, 32>}, {transform_indices = @transform_1, window_bounds = array<i64: 32, 128>}, {transform_indices = @transform_2, window_bounds = array<i64: 1, 128>}, {transform_indices = @transform_3, window_bounds = array<i64: 16, 128>}]} {
    %c0_i32 = arith.constant 0 : i32
    %0 = arith.cmpi eq, %arg2, %c0_i32 : i32
    %1 = arith.extui %0 : i1 to i32
    %c0_i32_0 = arith.constant 0 : i32
    %2 = arith.cmpi ne, %1, %c0_i32_0 : i32
    scf.if %2 {
      %cst_10 = arith.constant 0.000000e+00 : f32
      %13 = vector.broadcast %cst_10 : f32 to vector<16x128xf32>
      %c0_11 = arith.constant 0 : index
      %c0_12 = arith.constant 0 : index
      %14 = vector.load %arg7[%c0_11, %c0_12] : memref<16x128xf32, #tpu.memory_space<vmem>>, vector<16x128xf32>
      tpu.vector_store %arg7[%c0_11, %c0_12], %13 {strides = array<i32>} : memref<16x128xf32, #tpu.memory_space<vmem>>, vector<16x128xf32>,
    } else {
    }
    %c0 = arith.constant 0 : index
    %c0_1 = arith.constant 0 : index
    %3 = vector.load %arg7[%c0, %c0_1] : memref<16x128xf32, #tpu.memory_space<vmem>>, vector<16x128xf32>
    %c0_2 = arith.constant 0 : index
    %c0_3 = arith.constant 0 : index
    %4 = vector.load %arg3[%c0_2, %c0_3] : memref<16x32xf32, #tpu.memory_space<vmem>>, vector<16x32xf32>
    %5 = arith.truncf %4 : vector<16x32xf32> to vector<16x32xbf16>
    %c0_4 = arith.constant 0 : index
    %c0_5 = arith.constant 0 : index
    %6 = vector.load %arg4[%c0_4, %c0_5] : memref<32x128xbf16, #tpu.memory_space<vmem>>, vector<32x128xbf16>
    %cst = arith.constant dense<0.000000e+00> : vector<16x128xf32>
    %7 = tpu.matmul %5, %6, %cst {dimension_numbers = #tpu.dot_dimension_numbers<[1], [0], [0], [1], [0, 0, 1, 1], [], []>} : vector<16x32xbf16>, vector<32x128xbf16>, vector<16x128xf32> -> vector<16x128xf32>
    %8 = arith.addf %3, %7 : vector<16x128xf32>
    %c0_6 = arith.constant 0 : index
    %c0_7 = arith.constant 0 : index
    %9 = vector.load %arg7[%c0_6, %c0_7] : memref<16x128xf32, #tpu.memory_space<vmem>>, vector<16x128xf32>
    tpu.vector_store %arg7[%c0_6, %c0_7], %8 {strides = array<i32>} : memref<16x128xf32, #tpu.memory_space<vmem>>, vector<16x128xf32>,
    %c0_i32_8 = arith.constant 0 : i32
    %10 = arith.cmpi eq, %arg2, %c0_i32_8 : i32
    %11 = arith.extui %10 : i1 to i32
    %c0_i32_9 = arith.constant 0 : i32
    %12 = arith.cmpi ne, %11, %c0_i32_9 : i32
    scf.if %12 {
      %c0_10 = arith.constant 0 : index
      %c0_11 = arith.constant 0 : index
      %13 = vector.load %arg7[%c0_10, %c0_11] : memref<16x128xf32, #tpu.memory_space<vmem>>, vector<16x128xf32>
      %c0_12 = arith.constant 0 : index
      %c0_13 = arith.constant 0 : index
      %14 = vector.load %arg5[%c0_12, %c0_13] : memref<1x128xf32, #tpu.memory_space<vmem>>, vector<1x128xf32>
      %15 = vector.broadcast %14 : vector<1x128xf32> to vector<16x128xf32>
      %16 = arith.addf %13, %15 : vector<16x128xf32>
      %c0_14 = arith.constant 0 : index
      %c0_15 = arith.constant 0 : index
      %17 = vector.load %arg6[%c0_14, %c0_15] : memref<16x128xf32, #tpu.memory_space<vmem>>, vector<16x128xf32>
      tpu.vector_store %arg6[%c0_14, %c0_15], %16 {strides = array<i32>} : memref<16x128xf32, #tpu.memory_space<vmem>>, vector<16x128xf32>,
    } else {
    }
    return
  }
  func.func @transform_0(%arg0: i32, %arg1: i32, %arg2: i32) -> (i32, i32) {
    %c0_i32 = arith.constant 0 : i32
    return %arg0, %arg2 : i32, i32
  }
  func.func @transform_1(%arg0: i32, %arg1: i32, %arg2: i32) -> (i32, i32) {
    %c0_i32 = arith.constant 0 : i32
    return %arg2, %arg1 : i32, i32
  }
  func.func @transform_2(%arg0: i32, %arg1: i32, %arg2: i32) -> (i32, i32) {
    %c0_i32 = arith.constant 0 : i32
    %c0_i32_0 = arith.constant 0 : i32
    return %c0_i32, %arg1 : i32, i32
  }
  func.func @transform_3(%arg0: i32, %arg1: i32, %arg2: i32) -> (i32, i32) {
    %c0_i32 = arith.constant 0 : i32
    return %arg0, %arg1 : i32, i32
  }
}

module attributes {stable_mosaic.version = 11 : i64} {
  func.func @_attn_ln_kernel_causal(%arg0: i32, %arg1: i32, %arg2: memref<1x8x32xf32, #tpu.memory_space<vmem>>, %arg3: memref<1x8x32xf32, #tpu.memory_space<vmem>>, %arg4: memref<1x8x32xf32, #tpu.memory_space<vmem>>, %arg5: memref<32x32xbf16, #tpu.memory_space<vmem>>, %arg6: memref<32x32xbf16, #tpu.memory_space<vmem>>, %arg7: memref<32x32xbf16, #tpu.memory_space<vmem>>, %arg8: memref<32x32xbf16, #tpu.memory_space<vmem>>, %arg9: memref<1x32xf32, #tpu.memory_space<vmem>>, %arg10: memref<1x32xf32, #tpu.memory_space<vmem>>, %arg11: memref<1x32xf32, #tpu.memory_space<vmem>>, %arg12: memref<1x8x32xf32, #tpu.memory_space<vmem>>) attributes {dimension_semantics = [#tpu.dimension_semantics<parallel>, #tpu.dimension_semantics<parallel>], iteration_bounds = array<i64: 2, 1>, scalar_prefetch = 0 : i64, scratch_operands = 0 : i64, tpu.core_type = #tpu.core_type<tc>, window_params = [{transform_indices = @transform_0, window_bounds = array<i64: 1, 8, 32>}, {transform_indices = @transform_1, window_bounds = array<i64: 1, 8, 32>}, {transform_indices = @transform_2, window_bounds = array<i64: 1, 8, 32>}, {pipeline_mode = #tpu.pipeline_mode<synchronous>, transform_indices = @transform_3, window_bounds = array<i64: 32, 32>}, {pipeline_mode = #tpu.pipeline_mode<synchronous>, transform_indices = @transform_4, window_bounds = array<i64: 32, 32>}, {pipeline_mode = #tpu.pipeline_mode<synchronous>, transform_indices = @transform_5, window_bounds = array<i64: 32, 32>}, {pipeline_mode = #tpu.pipeline_mode<synchronous>, transform_indices = @transform_6, window_bounds = array<i64: 32, 32>}, {pipeline_mode = #tpu.pipeline_mode<synchronous>, transform_indices = @transform_7, window_bounds = array<i64: 1, 32>}, {pipeline_mode = #tpu.pipeline_mode<synchronous>, transform_indices = @transform_8, window_bounds = array<i64: 1, 32>}, {pipeline_mode = #tpu.pipeline_mode<synchronous>, transform_indices = @transform_9, window_bounds = array<i64: 1, 32>}, {transform_indices = @transform_10, window_bounds = array<i64: 1, 8, 32>}]} {
    %c8_i32 = arith.constant 8 : i32
    %0 = arith.muli %arg1, %c8_i32 : i32
    %1 = tpu.iota {dimensions = array<i32: 0>} : vector<8x8xi32>
    %2 = vector.broadcast %0 : i32 to vector<8x8xi32>
    %3 = arith.addi %1, %2 : vector<8x8xi32>
    %4 = tpu.iota {dimensions = array<i32: 1>} : vector<8x8xi32>
    %5 = arith.cmpi sgt, %4, %3 : vector<8x8xi32>
    %c0 = arith.constant 0 : index
    %c0_0 = arith.constant 0 : index
    %c0_1 = arith.constant 0 : index
    %6 = vector.load %arg2[%c0, %c0_0, %c0_1] : memref<1x8x32xf32, #tpu.memory_space<vmem>>, vector<1x8x32xf32>
    %7 = vector.shape_cast %6 : vector<1x8x32xf32> to vector<8x32xf32>
    %c0_2 = arith.constant 0 : index
    %c0_3 = arith.constant 0 : index
    %c0_4 = arith.constant 0 : index
    %8 = vector.load %arg3[%c0_2, %c0_3, %c0_4] : memref<1x8x32xf32, #tpu.memory_space<vmem>>, vector<1x8x32xf32>
    %9 = vector.shape_cast %8 : vector<1x8x32xf32> to vector<8x32xf32>
    %c0_5 = arith.constant 0 : index
    %c0_6 = arith.constant 0 : index
    %c0_7 = arith.constant 0 : index
    %10 = vector.load %arg4[%c0_5, %c0_6, %c0_7] : memref<1x8x32xf32, #tpu.memory_space<vmem>>, vector<1x8x32xf32>
    %11 = vector.shape_cast %10 : vector<1x8x32xf32> to vector<8x32xf32>
    %c0_8 = arith.constant 0 : index
    %c0_9 = arith.constant 0 : index
    %12 = vector.load %arg5[%c0_8, %c0_9] : memref<32x32xbf16, #tpu.memory_space<vmem>>, vector<32x32xbf16>
    %c0_10 = arith.constant 0 : index
    %c0_11 = arith.constant 0 : index
    %13 = vector.load %arg6[%c0_10, %c0_11] : memref<32x32xbf16, #tpu.memory_space<vmem>>, vector<32x32xbf16>
    %c0_12 = arith.constant 0 : index
    %c0_13 = arith.constant 0 : index
    %14 = vector.load %arg7[%c0_12, %c0_13] : memref<32x32xbf16, #tpu.memory_space<vmem>>, vector<32x32xbf16>
    %c0_14 = arith.constant 0 : index
    %c0_15 = arith.constant 0 : index
    %15 = vector.load %arg8[%c0_14, %c0_15] : memref<32x32xbf16, #tpu.memory_space<vmem>>, vector<32x32xbf16>
    %c0_16 = arith.constant 0 : index
    %c0_17 = arith.constant 0 : index
    %16 = vector.load %arg9[%c0_16, %c0_17] : memref<1x32xf32, #tpu.memory_space<vmem>>, vector<1x32xf32>
    %c0_18 = arith.constant 0 : index
    %c0_19 = arith.constant 0 : index
    %17 = vector.load %arg10[%c0_18, %c0_19] : memref<1x32xf32, #tpu.memory_space<vmem>>, vector<1x32xf32>
    %c0_20 = arith.constant 0 : index
    %c0_21 = arith.constant 0 : index
    %18 = vector.load %arg11[%c0_20, %c0_21] : memref<1x32xf32, #tpu.memory_space<vmem>>, vector<1x32xf32>
    %19 = arith.truncf %7 : vector<8x32xf32> to vector<8x32xbf16>
    %cst = arith.constant dense<0.000000e+00> : vector<8x32xf32>
    %20 = tpu.matmul %19, %12, %cst {dimension_numbers = #tpu.dot_dimension_numbers<[1], [0], [0], [1], [0, 0, 1, 1], [], []>} : vector<8x32xbf16>, vector<32x32xbf16>, vector<8x32xf32> -> vector<8x32xf32>
    %21 = arith.truncf %20 : vector<8x32xf32> to vector<8x32xbf16>
    %22 = arith.truncf %9 : vector<8x32xf32> to vector<8x32xbf16>
    %cst_22 = arith.constant dense<0.000000e+00> : vector<8x32xf32>
    %23 = tpu.matmul %22, %13, %cst_22 {dimension_numbers = #tpu.dot_dimension_numbers<[1], [0], [0], [1], [0, 0, 1, 1], [], []>} : vector<8x32xbf16>, vector<32x32xbf16>, vector<8x32xf32> -> vector<8x32xf32>
    %24 = arith.truncf %23 : vector<8x32xf32> to vector<8x32xbf16>
    %25 = arith.truncf %11 : vector<8x32xf32> to vector<8x32xbf16>
    %cst_23 = arith.constant dense<0.000000e+00> : vector<8x32xf32>
    %26 = tpu.matmul %25, %14, %cst_23 {dimension_numbers = #tpu.dot_dimension_numbers<[1], [0], [0], [1], [0, 0, 1, 1], [], []>} : vector<8x32xbf16>, vector<32x32xbf16>, vector<8x32xf32> -> vector<8x32xf32>
    %27 = arith.truncf %26 : vector<8x32xf32> to vector<8x32xbf16>
    %28 = vector.extract_strided_slice %21 {offsets = [0, 0], sizes = [8, 8], strides = [1, 1]} : vector<8x32xbf16> to vector<8x8xbf16>
    %29 = vector.extract_strided_slice %24 {offsets = [0, 0], sizes = [8, 8], strides = [1, 1]} : vector<8x32xbf16> to vector<8x8xbf16>
    %cst_24 = arith.constant dense<0.000000e+00> : vector<8x8xf32>
    %30 = tpu.matmul %28, %29, %cst_24 {dimension_numbers = #tpu.dot_dimension_numbers<[1], [1], [0], [0], [0, 0, 1, 0], [], []>} : vector<8x8xbf16>, vector<8x8xbf16>, vector<8x8xf32> -> vector<8x8xf32>
    %cst_25 = arith.constant -1.000000e+20 : f32
    %31 = vector.broadcast %cst_25 : f32 to vector<8x8xf32>
    %32 = arith.select %5, %31, %30 : vector<8x8xi1>, vector<8x8xf32>
    %cst_26 = arith.constant 0.176776692 : f32
    %33 = vector.broadcast %cst_26 : f32 to vector<8x8xf32>
    %34 = arith.mulf %32, %33 : vector<8x8xf32>
    %cst_27 = arith.constant dense<0xFF800000> : vector<8xf32>
    %35 = vector.multi_reduction <maximumf>, %34, %cst_27 [1] : vector<8x8xf32> to vector<8xf32>
    %36 = vector.shape_cast %35 : vector<8xf32> to vector<8x1xf32>
    %37 = vector.broadcast %36 : vector<8x1xf32> to vector<8x8xf32>
    %38 = arith.subf %34, %37 : vector<8x8xf32>
    %39 = math.exp %38 : vector<8x8xf32>
    %cst_28 = arith.constant dense<0.000000e+00> : vector<8xf32>
    %40 = vector.multi_reduction <add>, %39, %cst_28 [1] : vector<8x8xf32> to vector<8xf32>
    %41 = vector.shape_cast %40 : vector<8xf32> to vector<8x1xf32>
    %42 = tpu.reciprocal %41 {approx = true} : vector<8x1xf32> -> vector<8x1xf32>
    %43 = vector.broadcast %42 : vector<8x1xf32> to vector<8x8xf32>
    %44 = arith.mulf %39, %43 : vector<8x8xf32>
    %45 = arith.truncf %44 : vector<8x8xf32> to vector<8x8xbf16>
    %46 = vector.extract_strided_slice %27 {offsets = [0, 0], sizes = [8, 8], strides = [1, 1]} : vector<8x32xbf16> to vector<8x8xbf16>
    %cst_29 = arith.constant dense<0.000000e+00> : vector<8x8xf32>
    %47 = tpu.matmul %45, %46, %cst_29 {dimension_numbers = #tpu.dot_dimension_numbers<[1], [0], [0], [1], [0, 0, 1, 1], [], []>} : vector<8x8xbf16>, vector<8x8xbf16>, vector<8x8xf32> -> vector<8x8xf32>
    %48 = vector.extract_strided_slice %21 {offsets = [0, 8], sizes = [8, 8], strides = [1, 1]} : vector<8x32xbf16> to vector<8x8xbf16>
    %49 = vector.extract_strided_slice %24 {offsets = [0, 8], sizes = [8, 8], strides = [1, 1]} : vector<8x32xbf16> to vector<8x8xbf16>
    %cst_30 = arith.constant dense<0.000000e+00> : vector<8x8xf32>
    %50 = tpu.matmul %48, %49, %cst_30 {dimension_numbers = #tpu.dot_dimension_numbers<[1], [1], [0], [0], [0, 0, 1, 0], [], []>} : vector<8x8xbf16>, vector<8x8xbf16>, vector<8x8xf32> -> vector<8x8xf32>
    %cst_31 = arith.constant -1.000000e+20 : f32
    %51 = vector.broadcast %cst_31 : f32 to vector<8x8xf32>
    %52 = arith.select %5, %51, %50 : vector<8x8xi1>, vector<8x8xf32>
    %cst_32 = arith.constant 0.176776692 : f32
    %53 = vector.broadcast %cst_32 : f32 to vector<8x8xf32>
    %54 = arith.mulf %52, %53 : vector<8x8xf32>
    %cst_33 = arith.constant dense<0xFF800000> : vector<8xf32>
    %55 = vector.multi_reduction <maximumf>, %54, %cst_33 [1] : vector<8x8xf32> to vector<8xf32>
    %56 = vector.shape_cast %55 : vector<8xf32> to vector<8x1xf32>
    %57 = vector.broadcast %56 : vector<8x1xf32> to vector<8x8xf32>
    %58 = arith.subf %54, %57 : vector<8x8xf32>
    %59 = math.exp %58 : vector<8x8xf32>
    %cst_34 = arith.constant dense<0.000000e+00> : vector<8xf32>
    %60 = vector.multi_reduction <add>, %59, %cst_34 [1] : vector<8x8xf32> to vector<8xf32>
    %61 = vector.shape_cast %60 : vector<8xf32> to vector<8x1xf32>
    %62 = tpu.reciprocal %61 {approx = true} : vector<8x1xf32> -> vector<8x1xf32>
    %63 = vector.broadcast %62 : vector<8x1xf32> to vector<8x8xf32>
    %64 = arith.mulf %59, %63 : vector<8x8xf32>
    %65 = arith.truncf %64 : vector<8x8xf32> to vector<8x8xbf16>
    %66 = vector.extract_strided_slice %27 {offsets = [0, 8], sizes = [8, 8], strides = [1, 1]} : vector<8x32xbf16> to vector<8x8xbf16>
    %cst_35 = arith.constant dense<0.000000e+00> : vector<8x8xf32>
    %67 = tpu.matmul %65, %66, %cst_35 {dimension_numbers = #tpu.dot_dimension_numbers<[1], [0], [0], [1], [0, 0, 1, 1], [], []>} : vector<8x8xbf16>, vector<8x8xbf16>, vector<8x8xf32> -> vector<8x8xf32>
    %68 = vector.extract_strided_slice %21 {offsets = [0, 16], sizes = [8, 8], strides = [1, 1]} : vector<8x32xbf16> to vector<8x8xbf16>
    %69 = vector.extract_strided_slice %24 {offsets = [0, 16], sizes = [8, 8], strides = [1, 1]} : vector<8x32xbf16> to vector<8x8xbf16>
    %cst_36 = arith.constant dense<0.000000e+00> : vector<8x8xf32>
    %70 = tpu.matmul %68, %69, %cst_36 {dimension_numbers = #tpu.dot_dimension_numbers<[1], [1], [0], [0], [0, 0, 1, 0], [], []>} : vector<8x8xbf16>, vector<8x8xbf16>, vector<8x8xf32> -> vector<8x8xf32>
    %cst_37 = arith.constant -1.000000e+20 : f32
    %71 = vector.broadcast %cst_37 : f32 to vector<8x8xf32>
    %72 = arith.select %5, %71, %70 : vector<8x8xi1>, vector<8x8xf32>
    %cst_38 = arith.constant 0.176776692 : f32
    %73 = vector.broadcast %cst_38 : f32 to vector<8x8xf32>
    %74 = arith.mulf %72, %73 : vector<8x8xf32>
    %cst_39 = arith.constant dense<0xFF800000> : vector<8xf32>
    %75 = vector.multi_reduction <maximumf>, %74, %cst_39 [1] : vector<8x8xf32> to vector<8xf32>
    %76 = vector.shape_cast %75 : vector<8xf32> to vector<8x1xf32>
    %77 = vector.broadcast %76 : vector<8x1xf32> to vector<8x8xf32>
    %78 = arith.subf %74, %77 : vector<8x8xf32>
    %79 = math.exp %78 : vector<8x8xf32>
    %cst_40 = arith.constant dense<0.000000e+00> : vector<8xf32>
    %80 = vector.multi_reduction <add>, %79, %cst_40 [1] : vector<8x8xf32> to vector<8xf32>
    %81 = vector.shape_cast %80 : vector<8xf32> to vector<8x1xf32>
    %82 = tpu.reciprocal %81 {approx = true} : vector<8x1xf32> -> vector<8x1xf32>
    %83 = vector.broadcast %82 : vector<8x1xf32> to vector<8x8xf32>
    %84 = arith.mulf %79, %83 : vector<8x8xf32>
    %85 = arith.truncf %84 : vector<8x8xf32> to vector<8x8xbf16>
    %86 = vector.extract_strided_slice %27 {offsets = [0, 16], sizes = [8, 8], strides = [1, 1]} : vector<8x32xbf16> to vector<8x8xbf16>
    %cst_41 = arith.constant dense<0.000000e+00> : vector<8x8xf32>
    %87 = tpu.matmul %85, %86, %cst_41 {dimension_numbers = #tpu.dot_dimension_numbers<[1], [0], [0], [1], [0, 0, 1, 1], [], []>} : vector<8x8xbf16>, vector<8x8xbf16>, vector<8x8xf32> -> vector<8x8xf32>
    %88 = vector.extract_strided_slice %21 {offsets = [0, 24], sizes = [8, 8], strides = [1, 1]} : vector<8x32xbf16> to vector<8x8xbf16>
    %89 = vector.extract_strided_slice %24 {offsets = [0, 24], sizes = [8, 8], strides = [1, 1]} : vector<8x32xbf16> to vector<8x8xbf16>
    %cst_42 = arith.constant dense<0.000000e+00> : vector<8x8xf32>
    %90 = tpu.matmul %88, %89, %cst_42 {dimension_numbers = #tpu.dot_dimension_numbers<[1], [1], [0], [0], [0, 0, 1, 0], [], []>} : vector<8x8xbf16>, vector<8x8xbf16>, vector<8x8xf32> -> vector<8x8xf32>
    %cst_43 = arith.constant -1.000000e+20 : f32
    %91 = vector.broadcast %cst_43 : f32 to vector<8x8xf32>
    %92 = arith.select %5, %91, %90 : vector<8x8xi1>, vector<8x8xf32>
    %cst_44 = arith.constant 0.176776692 : f32
    %93 = vector.broadcast %cst_44 : f32 to vector<8x8xf32>
    %94 = arith.mulf %92, %93 : vector<8x8xf32>
    %cst_45 = arith.constant dense<0xFF800000> : vector<8xf32>
    %95 = vector.multi_reduction <maximumf>, %94, %cst_45 [1] : vector<8x8xf32> to vector<8xf32>
    %96 = vector.shape_cast %95 : vector<8xf32> to vector<8x1xf32>
    %97 = vector.broadcast %96 : vector<8x1xf32> to vector<8x8xf32>
    %98 = arith.subf %94, %97 : vector<8x8xf32>
    %99 = math.exp %98 : vector<8x8xf32>
    %cst_46 = arith.constant dense<0.000000e+00> : vector<8xf32>
    %100 = vector.multi_reduction <add>, %99, %cst_46 [1] : vector<8x8xf32> to vector<8xf32>
    %101 = vector.shape_cast %100 : vector<8xf32> to vector<8x1xf32>
    %102 = tpu.reciprocal %101 {approx = true} : vector<8x1xf32> -> vector<8x1xf32>
    %103 = vector.broadcast %102 : vector<8x1xf32> to vector<8x8xf32>
    %104 = arith.mulf %99, %103 : vector<8x8xf32>
    %105 = arith.truncf %104 : vector<8x8xf32> to vector<8x8xbf16>
    %106 = vector.extract_strided_slice %27 {offsets = [0, 24], sizes = [8, 8], strides = [1, 1]} : vector<8x32xbf16> to vector<8x8xbf16>
    %cst_47 = arith.constant dense<0.000000e+00> : vector<8x8xf32>
    %107 = tpu.matmul %105, %106, %cst_47 {dimension_numbers = #tpu.dot_dimension_numbers<[1], [0], [0], [1], [0, 0, 1, 1], [], []>} : vector<8x8xbf16>, vector<8x8xbf16>, vector<8x8xf32> -> vector<8x8xf32>
    %108 = tpu.concatenate %47, %67, %87, %107 in 1 : vector<8x8xf32>, vector<8x8xf32>, vector<8x8xf32>, vector<8x8xf32> -> vector<8x32xf32>
    %109 = arith.truncf %108 : vector<8x32xf32> to vector<8x32xbf16>
    %cst_48 = arith.constant dense<0.000000e+00> : vector<8x32xf32>
    %110 = tpu.matmul %109, %15, %cst_48 {dimension_numbers = #tpu.dot_dimension_numbers<[1], [0], [0], [1], [0, 0, 1, 1], [], []>} : vector<8x32xbf16>, vector<32x32xbf16>, vector<8x32xf32> -> vector<8x32xf32>
    %111 = vector.broadcast %16 : vector<1x32xf32> to vector<8x32xf32>
    %112 = arith.addf %110, %111 : vector<8x32xf32>
    %cst_49 = arith.constant dense<0.000000e+00> : vector<8xf32>
    %113 = vector.multi_reduction <add>, %112, %cst_49 [1] : vector<8x32xf32> to vector<8xf32>
    %114 = vector.shape_cast %113 : vector<8xf32> to vector<8x1xf32>
    %cst_50 = arith.constant 3.200000e+01 : f32
    %115 = vector.broadcast %cst_50 : f32 to vector<8x1xf32>
    %116 = arith.divf %114, %115 : vector<8x1xf32>
    %117 = arith.mulf %112, %112 : vector<8x32xf32>
    %cst_51 = arith.constant dense<0.000000e+00> : vector<8xf32>
    %118 = vector.multi_reduction <add>, %117, %cst_51 [1] : vector<8x32xf32> to vector<8xf32>
    %119 = vector.shape_cast %118 : vector<8xf32> to vector<8x1xf32>
    %cst_52 = arith.constant 3.200000e+01 : f32
    %120 = vector.broadcast %cst_52 : f32 to vector<8x1xf32>
    %121 = arith.divf %119, %120 : vector<8x1xf32>
    %122 = arith.mulf %116, %116 : vector<8x1xf32>
    %123 = arith.subf %121, %122 : vector<8x1xf32>
    %cst_53 = arith.constant 0.000000e+00 : f32
    %124 = vector.broadcast %cst_53 : f32 to vector<8x1xf32>
    %125 = arith.maximumf %123, %124 : vector<8x1xf32>
    %126 = vector.broadcast %116 : vector<8x1xf32> to vector<8x32xf32>
    %127 = arith.subf %112, %126 : vector<8x32xf32>
    %cst_54 = arith.constant 9.99999974E-6 : f32
    %128 = vector.broadcast %cst_54 : f32 to vector<8x1xf32>
    %129 = arith.addf %125, %128 : vector<8x1xf32>
    %130 = math.rsqrt %129 : vector<8x1xf32>
    %131 = vector.broadcast %130 : vector<8x1xf32> to vector<8x32xf32>
    %132 = arith.mulf %127, %131 : vector<8x32xf32>
    %133 = vector.broadcast %17 : vector<1x32xf32> to vector<8x32xf32>
    %134 = arith.mulf %132, %133 : vector<8x32xf32>
    %135 = vector.broadcast %18 : vector<1x32xf32> to vector<8x32xf32>
    %136 = arith.addf %134, %135 : vector<8x32xf32>
    %137 = arith.addf %136, %7 : vector<8x32xf32>
    %c0_55 = arith.constant 0 : index
    %c0_56 = arith.constant 0 : index
    %c0_57 = arith.constant 0 : index
    %138 = vector.load %arg12[%c0_55, %c0_56, %c0_57] : memref<1x8x32xf32, #tpu.memory_space<vmem>>, vector<1x8x32xf32>
    %139 = vector.shape_cast %138 : vector<1x8x32xf32> to vector<8x32xf32>
    %140 = vector.shape_cast %137 : vector<8x32xf32> to vector<1x8x32xf32>
    tpu.vector_store %arg12[%c0_55, %c0_56, %c0_57], %140 {strides = array<i32>} : memref<1x8x32xf32, #tpu.memory_space<vmem>>, vector<1x8x32xf32>,
    return
  }
  func.func @transform_0(%arg0: i32, %arg1: i32) -> (i32, i32, i32) {
    %c0_i32 = arith.constant 0 : i32
    %c0_i32_0 = arith.constant 0 : i32
    return %arg0, %arg1, %c0_i32 : i32, i32, i32
  }
  func.func @transform_1(%arg0: i32, %arg1: i32) -> (i32, i32, i32) {
    %c0_i32 = arith.constant 0 : i32
    %c0_i32_0 = arith.constant 0 : i32
    %c0_i32_1 = arith.constant 0 : i32
    return %arg0, %c0_i32, %c0_i32_0 : i32, i32, i32
  }
  func.func @transform_2(%arg0: i32, %arg1: i32) -> (i32, i32, i32) {
    %c0_i32 = arith.constant 0 : i32
    %c0_i32_0 = arith.constant 0 : i32
    %c0_i32_1 = arith.constant 0 : i32
    return %arg0, %c0_i32, %c0_i32_0 : i32, i32, i32
  }
  func.func @transform_3(%arg0: i32, %arg1: i32) -> (i32, i32) {
    %c0_i32 = arith.constant 0 : i32
    %c0_i32_0 = arith.constant 0 : i32
    %c0_i32_1 = arith.constant 0 : i32
    return %c0_i32, %c0_i32_0 : i32, i32
  }
  func.func @transform_4(%arg0: i32, %arg1: i32) -> (i32, i32) {
    %c0_i32 = arith.constant 0 : i32
    %c0_i32_0 = arith.constant 0 : i32
    %c0_i32_1 = arith.constant 0 : i32
    return %c0_i32, %c0_i32_0 : i32, i32
  }
  func.func @transform_5(%arg0: i32, %arg1: i32) -> (i32, i32) {
    %c0_i32 = arith.constant 0 : i32
    %c0_i32_0 = arith.constant 0 : i32
    %c0_i32_1 = arith.constant 0 : i32
    return %c0_i32, %c0_i32_0 : i32, i32
  }
  func.func @transform_6(%arg0: i32, %arg1: i32) -> (i32, i32) {
    %c0_i32 = arith.constant 0 : i32
    %c0_i32_0 = arith.constant 0 : i32
    %c0_i32_1 = arith.constant 0 : i32
    return %c0_i32, %c0_i32_0 : i32, i32
  }
  func.func @transform_7(%arg0: i32, %arg1: i32) -> (i32, i32) {
    %c0_i32 = arith.constant 0 : i32
    %c0_i32_0 = arith.constant 0 : i32
    %c0_i32_1 = arith.constant 0 : i32
    return %c0_i32, %c0_i32_0 : i32, i32
  }
  func.func @transform_8(%arg0: i32, %arg1: i32) -> (i32, i32) {
    %c0_i32 = arith.constant 0 : i32
    %c0_i32_0 = arith.constant 0 : i32
    %c0_i32_1 = arith.constant 0 : i32
    return %c0_i32, %c0_i32_0 : i32, i32
  }
  func.func @transform_9(%arg0: i32, %arg1: i32) -> (i32, i32) {
    %c0_i32 = arith.constant 0 : i32
    %c0_i32_0 = arith.constant 0 : i32
    %c0_i32_1 = arith.constant 0 : i32
    return %c0_i32, %c0_i32_0 : i32, i32
  }
  func.func @transform_10(%arg0: i32, %arg1: i32) -> (i32, i32, i32) {
    %c0_i32 = arith.constant 0 : i32
    %c0_i32_0 = arith.constant 0 : i32
    return %arg0, %arg1, %c0_i32 : i32, i32, i32
  }
}

</mosaic_0001>

<bundles_post_ra>
// kernel: transformer_forward.12
= control target key start
LH: loop header
LB: loop body
LE: loop exit
PB: predicated region body
PF: predicated region fallthrough
CT: control target
= control target key end

     0   :  { %vm50_vm0 = vcmask 261120   ;;  %vm107_vm1 = vcmask 523264   ;;  %v245_v28 = vmov 32.0   ;;  %s349_s1 = inlined_call_operand.vmem [shape: bf16[32,64], index: 1, kind: input, shape index: {}]   ;;  %s350_s0 = inlined_call_operand.vmem [shape: f32[16,32], index: 0, kind: input, shape index: {}]   ;;  %s351_s2 = inlined_call_operand.vmem [shape: f32[1,64], index: 2, kind: input, shape index: {}]   ;;  %s352_s4 = inlined_call_operand.vmem [shape: f32[1,32], index: 4, kind: input, shape index: {}]   ;;  %s353_s3 = inlined_call_operand.vmem [shape: bf16[64,32], index: 3, kind: input, shape index: {}]   ;;  %s354_s5 = inlined_call_operand.vmem [shape: f32[1,32], index: 5, kind: input, shape index: {}]   ;;  %s355_s6 = inlined_call_operand.vmem [shape: f32[1,32], index: 6, kind: input, shape index: {}]   ;;  %s356_s7 = inlined_call_operand.vmem [shape: f32[16,32], index: 7, kind: output, shape index: {}]  }
   0x1   :  { %v229_v0 = vld [vmem:[%s349_s1 + $0x8] sm:$0xff]  ;;  %v228_v1 = vld [vmem:[%s349_s1] sm:$0xff]  ;;  %v233_v5 = vld [vmem:[%s353_s3 + $0x18] sm:$0xff]  ;;  %239 = vrcp.f32 %v245_v28 }
   0x2   :  { %60 = vmatpush.bf16.msra.mxu0 %v229_v0  ;;  %v295_v2 = vld [vmem:[%s350_s0] sm:$0xff]  ;;  %v300_v3 = vld [vmem:[%s350_s0 + $0x8] sm:$0xff]  ;;  %115 = vmatpush.bf16.msra.mxu1 %v233_v5  ;;  %v232_v6 = vld [vmem:[%s353_s3 + $0x10] sm:$0xff] }
   0x3   :  { %v29_v4 = vpack.c.bf16 %v300_v3, %v295_v2  ;;  %v231_v7 = vld [vmem:[%s353_s3 + $0x8] sm:$0xff]  ;;  %v230_v8 = vld [vmem:[%s353_s3] sm:$0xff] }
   0x4   :  { %v235_v10 = vld [vmem:[%s351_s2] ss:$0 sm:$0xff] }
   0x5   :  { %v236_v17 = vld [vmem:[%s352_s4] ss:$0 sm:$0xff] }
   0x6   :  { %61 = vmatpush.bf16.msra.mxu0 %v228_v1  ;;  %116 = vmatpush.bf16.msra.mxu1 %v232_v6  ;;  %v237_v59 = vld [vmem:[%s354_s5] ss:$0 sm:$0xff] }
   0x7   :  { %v240_v29 = vpop.eup %239  ;;  %v238_v62 = vld [vmem:[%s355_s6] ss:$0 sm:$0xff] }
   0x8   :  { %v132_v30 = vmul.f32 32.0, %v240_v29  ;;  %vm136_vm2 = vweird.f32 %v240_v29 }
   0x9   :  { %210 = vmatmul.msk.bf16.vlgmr.msra.gmra.mxu0 %vm50_vm0, %v29_v4 }
   0xa   :  { %117 = vmatpush.bf16.msra.mxu1 %v231_v7  ;;  %v133_v31 = vsub.f32 1.0, %v132_v30 }
   0xc   :  { %v134_v32 = vmul.f32 %v240_v29, %v133_v31 }
   0xe   :  { %118 = vmatpush.bf16.msra.mxu1 %v230_v8  ;;  %v135_v33 = vadd.f32 %v240_v29, %v134_v32 }
  0x10   :  { %v137_v34 = vsel %vm136_vm2, %v240_v29, %v135_v33 }
  0x86   :  { %v63_v9 = vpop.f32.mrf.mxu0 }
  0x87   :  { %v64_v11 = vadd.f32 %v235_v10, %v63_v9 }
  0x89   :  { %v68_v14 = vmax.f32 %v64_v11, 0.0 }
  0x8e   :  { %v65_v12 = vpop.f32.mrf.mxu0 }
  0x8f   :  { %v66_v13 = vadd.f32 %v235_v10, %v65_v12 }
  0x91   :  { %v69_v15 = vmax.f32 %v66_v13, 0.0 }
  0x93   :  { %v70_v16 = vpack.c.bf16 %v69_v15, %v68_v14 }
  0x95   :  { %227 = vmatmul.msk.bf16.vlgmr.msra.gmra.mxu1 %vm107_vm1, %v70_v16 }
 0x112   :  { %v120_v18 = vpop.f32.mrf.mxu1 }
 0x113   :  { %v121_v19 = vadd.f32 %v236_v17, %v120_v18 }
 0x115   :  { %v125_v20 = vsel %vm50_vm0, %v121_v19, 0.0  ;;  %v140_v21 = vmul.f32 %v121_v19, %v121_v19 }
 0x116   :  { %126 = vadd.xlane.f32.xlu0 %v125_v20 }
 0x117   :  { %v142_v22 = vsel %vm50_vm0, %v140_v21, 0.0 }
 0x118   :  { %143 = vadd.xlane.f32.xlu1 %v142_v22 }
 0x11a   :  { %v122_v23 = vpop.f32.mrf.mxu1 }
 0x11b   :  { %v325_v24 = vadd.f32 %v236_v17, %v122_v23 }
 0x11d   :  { %v128_v25 = vsel %vm50_vm0, %v325_v24, 0.0  ;;  %v141_v26 = vmul.f32 %v325_v24, %v325_v24 }
 0x11e   :  { %129 = vadd.xlane.f32.xlu0 %v128_v25 }
 0x11f   :  { %v145_v27 = vsel %vm50_vm0, %v141_v26, 0.0 }
 0x120   :  { %146 = vadd.xlane.f32.xlu1 %v145_v27 }
 0x189   :  { %v127_v35 = vpop.xlane.xlu0 %126 }
 0x18a   :  { %v138_v36 = vmul.f32 %v137_v34, %v127_v35 }
 0x18b   :  { %v144_v37 = vpop.xlane.xlu1 %143 }
 0x18c   :  { %v150_v38 = vmul.f32 %v138_v36, %v138_v36  ;;  %v148_v39 = vmul.f32 %v144_v37, %v137_v34  ;;  %v156_v58 = vsub.f32 %v121_v19, %v138_v36 }
 0x18e   :  { %v152_v40 = vsub.f32 %v148_v39, %v150_v38 }
 0x190   :  { %v154_v41 = vmax.f32 %v152_v40, 0.0 }
 0x191   :  { %v130_v42 = vpop.xlane.xlu0 %129 }
 0x192   :  { %v158_v43 = vadd.f32 1e-05, %v154_v41  ;;  %v139_v44 = vmul.f32 %v137_v34, %v130_v42 }
 0x193   :  { %v147_v45 = vpop.xlane.xlu1 %146 }
 0x194   :  { %241 = vrsqrt.f32 %v158_v43  ;;  %v151_v46 = vmul.f32 %v139_v44, %v139_v44  ;;  %v149_v47 = vmul.f32 %v147_v45, %v137_v34  ;;  %vm166_vm4 = vweird.f32 %v158_v43 }
 0x195   :  { %v157_v9 = vsub.f32 %v325_v24, %v139_v44 }
 0x196   :  { %v153_v48 = vsub.f32 %v149_v47, %v151_v46 }
 0x198   :  { %v155_v49 = vmax.f32 %v153_v48, 0.0 }
 0x19a   :  { %v242_v50 = vpop.eup %241  ;;  %v159_v52 = vadd.f32 1e-05, %v155_v49 }
 0x19b   :  { %v161_v51 = vmul.f32 %v242_v50, %v158_v43  ;;  %vm167_vm3 = vweird.f32 %v242_v50 }
 0x19c   :  { %243 = vrsqrt.f32 %v159_v52  ;;  %vm168_vm5 = vmor %vm166_vm4, %vm167_vm3  ;;  %vm176_vm7 = vweird.f32 %v159_v52 }
 0x19d   :  { %v162_v53 = vmul.f32 %v242_v50, %v161_v51 }
 0x19f   :  { %v163_v54 = vmul.f32 0.5, %v162_v53 }
 0x1a1   :  { %v164_v55 = vsub.f32 1.5, %v163_v54 }
 0x1a2   :  { %v244_v56 = vpop.eup %243 }
 0x1a3   :  { %v165_v57 = vmul.f32 %v242_v50, %v164_v55  ;;  %v171_v60 = vmul.f32 %v244_v56, %v159_v52  ;;  %vm177_vm6 = vweird.f32 %v244_v56 }
 0x1a4   :  { %vm178_vm8 = vmor %vm176_vm7, %vm177_vm6 }
 0x1a5   :  { %v169_v61 = vsel %vm168_vm5, %v242_v50, %v165_v57  ;;  %v172_v0 = vmul.f32 %v244_v56, %v171_v60 }
 0x1a6   :  { %v180_v63 = vmul.f32 %v169_v61, %v156_v58 }
 0x1a7   :  { %v173_v4 = vmul.f32 0.5, %v172_v0 }
 0x1a8   :  { %v186_v1 = vmul.f32 %v237_v59, %v180_v63 }
 0x1a9   :  { %v174_v6 = vsub.f32 1.5, %v173_v4 }
 0x1aa   :  { %v192_v5 = vadd.f32 %v238_v62, %v186_v1 }
 0x1ab   :  { %v175_v8 = vmul.f32 %v244_v56, %v174_v6 }
 0x1ac   :  { %v194_v7 = vadd.f32 %v192_v5, %v295_v2 }
 0x1ad   :  { %v179_v10 = vsel %vm178_vm8, %v244_v56, %v175_v8 }
 0x1ae   :  { %196 = vst.msk [vmem:[%s356_s7] sm:$0xff] %vm50_vm0, %v194_v7  ;;  %v181_v11 = vmul.f32 %v179_v10, %v157_v9 }
 0x1b0   :  { %v187_v12 = vmul.f32 %v237_v59, %v181_v11 }
 0x1b2   :  { %v193_v13 = vadd.f32 %v238_v62, %v187_v12 }
 0x1b4   :  { %v195_v14 = vadd.f32 %v193_v13, %v300_v3 }
 0x1b6   :  { %197 = vst.msk [vmem:[%s356_s7 + $0x8] sm:$0xff] %vm50_vm0, %v195_v14 }

// kernel: transformer_forward.21
= control target key start
LH: loop header
LB: loop body
LE: loop exit
PB: predicated region body
PF: predicated region fallthrough
CT: control target
= control target key end

     0   :  { %vm42_vm0 = vcmask 261120   ;;  %s134_s1 = inlined_call_operand.vmem [shape: bf16[32,128], index: 1, kind: input, shape index: {}]   ;;  %s135_s0 = inlined_call_operand.vmem [shape: f32[16,32], index: 0, kind: input, shape index: {}]   ;;  %s136_s2 = inlined_call_operand.vmem [shape: f32[1,128], index: 2, kind: input, shape index: {}]   ;;  %s137_s3 = inlined_call_operand.vmem [shape: f32[16,128], index: 3, kind: output, shape index: {}]  }
   0x1   :  { %v91_v0 = vld [vmem:[%s134_s1 + $0x8] sm:$0xff]  ;;  %v90_v1 = vld [vmem:[%s134_s1] sm:$0xff] }
   0x2   :  { %52 = vmatpush.bf16.msra.mxu0 %v91_v0  ;;  %v23_v2 = vld [vmem:[%s135_s0] sm:$0xff]  ;;  %v24_v3 = vld [vmem:[%s135_s0 + $0x8] sm:$0xff] }
   0x3   :  { %v25_v4 = vpack.c.bf16 %v24_v3, %v23_v2  ;;  %v92_v5 = vld [vmem:[%s136_s2] ss:$0 sm:$0xff] }
   0x6   :  { %53 = vmatpush.bf16.msra.mxu0 %v90_v1 }
   0x9   :  { %89 = vmatmul.msk.bf16.vlgmr.msra.gmra.mxu0 %vm42_vm0, %v25_v4 }
  0x86   :  { %v55_v6 = vpop.f32.mrf.mxu0 }
  0x87   :  { %v73_v7 = vadd.f32 %v92_v5, %v55_v6 }
  0x89   :  { %75 = vst [vmem:[%s137_s3] sm:$0xff] %v73_v7 }
  0x8e   :  { %v57_v8 = vpop.f32.mrf.mxu0 }
  0x8f   :  { %v74_v9 = vadd.f32 %v92_v5, %v57_v8 }
  0x91   :  { %76 = vst [vmem:[%s137_s3 + $0x8] sm:$0xff] %v74_v9 }

// kernel: transformer_forward.11
= control target key start
LH: loop header
LB: loop body
LE: loop exit
PB: predicated region body
PF: predicated region fallthrough
CT: control target
= control target key end

     0   :  { %s1225_s17 = smov 0   ;;  %s1227_s18 = smov 0   ;;  %s1368_s0 = inlined_call_operand.vmem [shape: f32[2,1,8], index: 0, kind: input, shape index: {}]   ;;  %s1369_s1 = inlined_call_operand.vmem [shape: f32[2,8,32], index: 1, kind: input, shape index: {}, may-alias: {1,2,3}]   ;;  %s1370_s2 = inlined_call_operand.vmem [shape: f32[2,8,32], index: 2, kind: input, shape index: {}, may-alias: {1,2,3}]   ;;  %s1371_s3 = inlined_call_operand.vmem [shape: f32[2,8,32], index: 3, kind: input, shape index: {}, may-alias: {1,2,3}]   ;;  %s1372_s4 = inlined_call_operand.vmem [shape: bf16[32,32], index: 4, kind: input, shape index: {}]   ;;  %s1373_s5 = inlined_call_operand.vmem [shape: bf16[32,32], index: 5, kind: input, shape index: {}]   ;;  %s1374_s6 = inlined_call_operand.vmem [shape: bf16[32,32], index: 6, kind: input, shape index: {}]   ;;  %s1375_s7 = inlined_call_operand.vmem [shape: bf16[32,32], index: 7, kind: input, shape index: {}]   ;;  %s1376_s8 = inlined_call_operand.vmem [shape: f32[1,32], index: 8, kind: input, shape index: {}]   ;;  %s1377_s9 = inlined_call_operand.vmem [shape: f32[1,32], index: 9, kind: input, shape index: {}]   ;;  %s1378_s10 = inlined_call_operand.vmem [shape: f32[1,32], index: 10, kind: input, shape index: {}]   ;;  %s1379_s11 = inlined_call_operand.vmem [shape: f32[2,8,32], index: 11, kind: output, shape index: {}]  }
   0x1   :  { %s1229_s19 = smov 0  }
   0x2 LB: > { %s33_s20 = sadd.s32 1, %s1151_s18  ;;  %p1019_p0 = scmp.ge.s32.totalorder %s1155_s19, 1  ;;  %s1155_s19 = sphi %s1229_s19, %s21_s19   ;;  %s1151_s18 = sphi %s1227_s18, %s1383_s18   ;;  %s1147_s17 = sphi %s1225_s17, %s1382_s17  }
   0x3   : > { %p35_p1 = scmp.ge.s32.totalorder %s33_s20, 2  ;;  %p381_p2 = scmp.lt.s32.totalorder %s1155_s19, 3 }
   0x5   : > { %s1385_s20 = smov (%p35_p1, %s33_s20), 0  ;;  %p382_p3 = pnand %p1019_p0, %p381_p2 }
   0x6   : > { %p436_p4 = scmp.lt.s32.totalorder (!%p382_p3), %s1147_s17, 1  ;;  %s1157_s21 = smov (!%p382_p3), 112  }
   0x7   : > { %385 = sbr.rel (%p382_p3) target bundleno = 1235 (0x4d3), region = 64  ;;  %s1158_s22 = smov (!%p382_p3), 120  }
   0x8   : > { %s1159_s23 = smov (!%p382_p3), 104   ;;  %s1161_s15 = smov (!%p382_p3), 8  }
   0xc   : > { %v1071_v0 = vld [vmem:[%s1372_s4 + $0x8] sm:$0xff]  ;;  %v1070_v2 = vld [vmem:[%s1372_s4] sm:$0xff]  ;;  %s1387_s17 = smov (!%p436_p4, %s1147_s17), 1  ;;  %vm499_vm0 = vcmask 261120   ;;  %vm577_vm1 = vcmask 64512   ;;  %v1160_v28 = vmov 0  }
   0xd   : > { %v1073_v1 = vld [vmem:[%s1373_s5 + $0x8] sm:$0xff]  ;;  %509 = vmatpush.bf16.msra.mxu0 %v1071_v0  ;;  %v1072_v3 = vld [vmem:[%s1373_s5] sm:$0xff]  ;;  %s1258_s29 = sshll.u32 %s1387_s17, 3  ;;  %s438_s26 = scalar_lea.vmem %s1368_s0, %s1387_s17  ;;  %vm617_vm4 = vcmask 1043456   ;;  %vm830_vm5 = vcmask 130048   ;;  %vm832_vm6 = vcmask 195584  }
   0xe   : > { %539 = vmatpush.bf16.msra.mxu1 %v1073_v1  ;;  %s445_s13 = scalar_lea.vmem %s1369_s1, %s1258_s29  ;;  %s449_s16 = scalar_lea.vmem %s1370_s2, %s1258_s29  ;;  %v462_v23 = vld [vmem:[%s438_s26] sm:$0x1]  ;;  %v1075_v38 = vld [vmem:[%s1374_s6 + $0x8] sm:$0xff] }
   0xf   : > { %v1264_v4 = vld [vmem:[%s445_s13] sm:$0xff]  ;;  %vm463_vm2 = vcmp.eq.f32.partialorder %v462_v23, 0.0  ;;  %569 = vmatpush.bf16.msra.mxu2 %v1075_v38  ;;  %s453_s12 = scalar_lea.vmem %s1371_s3, %s1258_s29 }
  0x10   : > { %v486_v5 = vpack.c.bf16 %v1264_v4, %v1264_v4  ;;  %v465_v6 = vld [vmem:[%s449_s16] sm:$0xff]  ;;  %v597_v29 = vsel %vm463_vm2, 1, %v1160_v28  ;;  %s1162_s16 = smov 24  }
  0x11   : > { %510 = vmatpush.bf16.msra.mxu0 %v1070_v2  ;;  %v517_v7 = vpack.c.bf16 %v465_v6, %v465_v6  ;;  %v598_v30 = vperm.slane %v597_v29, 0  ;;  %v1074_v39 = vld [vmem:[%s1374_s6] sm:$0xff] }
  0x12   : > { %540 = vmatpush.bf16.msra.mxu1 %v1072_v3  ;;  %v466_v40 = vld [vmem:[%s453_s12] sm:$0xff] }
  0x13   : > { %vm1291_vm3 = vcmp.eq.s32.totalorder %v598_v30, 1  ;;  %570 = vmatpush.bf16.msra.mxu2 %v1074_v39  ;;  %v547_v41 = vpack.c.bf16 %v466_v40, %v466_v40 }
  0x14   : > { %1032 = vmatmul.msk.bf16.vlgmr.msra.gmra.mxu0 %vm499_vm0, %v486_v5 }
  0x15   : > { %1041 = vmatmul.msk.bf16.vlgmr.msra.gmra.mxu1 %vm499_vm0, %v517_v7 }
  0x16   : > { %1050 = vmatmul.msk.bf16.vlgmr.msra.gmra.mxu2 %vm499_vm0, %v547_v41 }
  0x91   : > { %v512_v8 = vpop.f32.mrf.mxu0 }
  0x92   : > { %v516_v9 = vpack.c.bf16 %v512_v8, %v512_v8  ;;  %v542_v10 = vpop.f32.mrf.mxu1 }
  0x93   : > { %v546_v11 = vpack.c.bf16 %v542_v10, %v542_v10 }
  0x94   : > { %v635_v12 = vunpack.c.l.b16 %v516_v9 }
  0x95   : > { %v640_v13 = vunpack.c.l.b16 %v546_v11  ;;  %v582_v14 = vsel %vm577_vm1, %v546_v11, 0 }
  0x96   : > { %v636_v15 = vpack.c.b16 %v635_v12, %v635_v12  ;;  %591 = vmatpush.bf16.xpose.msra.mxu3 %v582_v14 }
  0x97   : > { %v641_v16 = vpack.c.b16 %v640_v13, %v640_v13 }
  0x98   : > { %701 = vrot.lane.b32.xlu2 %v636_v15, %s1157_s21 }
  0x99   : > { %703 = vrot.lane.b32.xlu1 %v641_v16, %s1157_s21  ;;  %642 = vrot.lane.b32.xlu0 %v641_v16, %s1158_s22  ;;  %v514_v17 = vpop.f32.mrf.mxu0  ;;  %v572_v62 = vpop.f32.mrf.mxu2 }
  0x9a   : > { %v544_v18 = vpop.f32.mrf.mxu1  ;;  %v576_v63 = vpack.c.bf16 %v572_v62, %v572_v62 }
  0x9c   : > { %v678_v0 = vunpack.c.l.b16 %v576_v63  ;;  %v619_v1 = vsel %vm617_vm4, %v576_v63, 0 }
  0x9d   : > { %1051 = vmatmul.msk.bf16.vlgmr.msra.gmra.mxu3 %vm577_vm1, %v516_v9  ;;  %628 = vmatpush.bf16.msrb.mxu0 %v619_v1 }
  0x9e   : > { %v679_v2 = vpack.c.b16 %v678_v0, %v678_v0 }
  0xa0   : > { %759 = vrot.lane.b32.xlu2 %v636_v15, %s1159_s23 }
  0xa1   : > { %761 = vrot.lane.b32.xlu1 %v641_v16, %s1159_s23  ;;  %637 = vrot.lane.b32.xlu0 %v636_v15, %s1158_s22  ;;  %v574_v3 = vpop.f32.mrf.mxu2 }
  0xa2   : > { %v1164_v3 = vmov 32.0  }
  0xf2   : > { %v702_v24 = vpop.permute.xlu2 %701 }
  0xfa   : > { %v760_v35 = vpop.permute.xlu2 %759 }
 0x10b   : > { %v704_v19 = vpop.permute.xlu1 %703  ;;  %v643_v20 = vpop.permute.xlu0 %642 }
 0x10c   : > { %v648_v21 = vsel %vm577_vm1, %v643_v20, 0  ;;  %v709_v22 = vsel %vm577_vm1, %v704_v19, 0 }
 0x10d   : > { %657 = vmatpush.bf16.xpose.msrb.mxu1 %v648_v21  ;;  %718 = vmatpush.bf16.xpose.msrb.mxu3 %v709_v22 }
 0x113   : > { %v762_v25 = vpop.permute.xlu1 %761  ;;  %v638_v26 = vpop.permute.xlu0 %637 }
 0x114   : > { %v767_v27 = vsel %vm577_vm1, %v762_v25, 0  ;;  %1053 = vmatmul.msk.bf16.vlgmr.msrb.gmra.mxu1 %vm577_vm1, %v638_v26  ;;  %1055 = vmatmul.msk.bf16.vlgmr.msrb.gmra.mxu3 %vm577_vm1, %v702_v24 }
 0x115   : > { %776 = vmatpush.bf16.xpose.msra.mxu1 %v767_v27 }
 0x120   : > { %v593_v32 = vpop.f32.mrf.mxu3 }
 0x121   : > { %v600_v33 = vsel %vm1291_vm3, -1e+20, %v593_v32 }
 0x122   : > { %v601_v34 = vmul.f32 0.17677669, %v600_v33 }
 0x124   : > { %1057 = vmatmul.msk.bf16.vlgmr.msra.gmra.mxu1 %vm577_vm1, %v760_v35  ;;  %v602_v36 = vsel %vm577_vm1, %v601_v34, -inf }
 0x125   : > { %603 = vmax.xlane.f32.xlu1 %v602_v36 }
 0x128   : > { %v595_v37 = vpop.f32.mrf.mxu3 }
 0x191   : > { %v659_v42 = vpop.f32.mrf.mxu1 }
 0x192   : > { %v663_v43 = vsel %vm1291_vm3, -1e+20, %v659_v42 }
 0x193   : > { %v664_v44 = vmul.f32 0.17677669, %v663_v43 }
 0x195   : > { %v665_v45 = vsel %vm577_vm1, %v664_v44, -inf }
 0x196   : > { %666 = vmax.xlane.f32.xlu0 %v665_v45 }
 0x197   : > { %v720_v46 = vpop.f32.mrf.mxu3 }
 0x198   : > { %v604_v47 = vpop.xlane.xlu1 %603  ;;  %v724_v58 = vsel %vm1291_vm3, -1e+20, %v720_v46 }
 0x199   : > { %v605_v48 = vsub.f32 %v601_v34, %v604_v47  ;;  %v661_v49 = vpop.f32.mrf.mxu1  ;;  %v725_v59 = vmul.f32 0.17677669, %v724_v58 }
 0x19b   : > { %v606_v50 = vmul.f32 1.442695, %v605_v48  ;;  %v726_v61 = vsel %vm577_vm1, %v725_v59, -inf }
 0x19d   : > { %1113 = vpow2.f32 %v606_v50  ;;  %v1077_v50 = vld [vmem:[%s1375_s7 + $0x8] sm:$0xff] }
 0x19e   : > { %859 = vmatpush.bf16.msra.mxu3 %v1077_v50 }
 0x19f   : > { %v722_v51 = vpop.f32.mrf.mxu3 }
 0x1a0   : > { %v1076_v51 = vld [vmem:[%s1375_s7] sm:$0xff] }
 0x1a1   : > { %v778_v52 = vpop.f32.mrf.mxu1 }
 0x1a2   : > { %v782_v53 = vsel %vm1291_vm3, -1e+20, %v778_v52  ;;  %860 = vmatpush.bf16.msra.mxu3 %v1076_v51 }
 0x1a3   : > { %v1114_v54 = vpop.eup %1113  ;;  %v783_v55 = vmul.f32 0.17677669, %v782_v53 }
 0x1a4   : > { %v608_v56 = vsel %vm577_vm1, %v1114_v54, 0.0 }
 0x1a5   : > { %609 = vadd.xlane.f32.xlu1 %v608_v56  ;;  %v784_v57 = vsel %vm577_vm1, %v783_v55, -inf }
 0x1a6   : > { %785 = vmax.xlane.f32.xlu2 %v784_v57 }
 0x1a9   : > { %v780_v60 = vpop.f32.mrf.mxu1 }
 0x1ae   : > { %727 = vmax.xlane.f32.xlu2 %v726_v61 }
 0x1c6   : > { %680 = vrot.lane.b32.xlu2 %v679_v2, %s1158_s22 }
 0x209   : > { %v667_v5 = vpop.xlane.xlu0 %666 }
 0x20a   : > { %v668_v6 = vsub.f32 %v664_v44, %v667_v5 }
 0x20c   : > { %v669_v7 = vmul.f32 1.442695, %v668_v6 }
 0x20e   : > { %1115 = vpow2.f32 %v669_v7 }
 0x214   : > { %v1116_v8 = vpop.eup %1115 }
 0x215   : > { %v671_v9 = vsel %vm577_vm1, %v1116_v8, 0.0 }
 0x216   : > { %672 = vadd.xlane.f32.xlu0 %v671_v9 }
 0x218   : > { %v610_v10 = vpop.xlane.xlu1 %609 }
 0x219   : > { %1117 = vrcp.f32 %v610_v10  ;;  %v786_v11 = vpop.xlane.xlu2 %785 }
 0x21a   : > { %v787_v12 = vsub.f32 %v783_v55, %v786_v11 }
 0x21c   : > { %v788_v13 = vmul.f32 1.442695, %v787_v12 }
 0x21e   : > { %1119 = vpow2.f32 %v788_v13 }
 0x21f   : > { %v1118_v14 = vpop.eup %1117 }
 0x220   : > { %v612_v15 = vmul.f32 %v1118_v14, %v1114_v54 }
 0x221   : > { %v728_v16 = vpop.xlane.xlu2 %727 }
 0x222   : > { %v729_v17 = vsub.f32 %v725_v59, %v728_v16  ;;  %v613_v18 = vpack.c.bf16 %v612_v15, %v612_v15  ;;  %v1110_v59 = vld [vmem:[%s1376_s8] ss:$0 sm:$0xff] }
 0x224   : > { %v1120_v19 = vpop.eup %1119  ;;  %v730_v20 = vmul.f32 1.442695, %v729_v17  ;;  %1052 = vmatmul.msk.bf16.vlgmr.msrb.gmra.mxu0 %vm577_vm1, %v613_v18 }
 0x225   : > { %v790_v21 = vsel %vm577_vm1, %v1120_v19, 0.0 }
 0x226   : > { %1121 = vpow2.f32 %v730_v20  ;;  %791 = vadd.xlane.f32.xlu0 %v790_v21 }
 0x229   : > { %v681_v24 = vpop.permute.xlu2 %680 }
 0x22a   : > { %v686_v25 = vsel %vm617_vm4, %v681_v24, 0 }
 0x22b   : > { %695 = vmatpush.bf16.msrb.mxu2 %v686_v25  ;;  %v1111_v25 = vld [vmem:[%s1377_s9] ss:$0 sm:$0xff] }
 0x22c   : > { %v1122_v22 = vpop.eup %1121 }
 0x22d   : > { %v732_v23 = vsel %vm577_vm1, %v1122_v22, 0.0 }
 0x22e   : > { %733 = vadd.xlane.f32.xlu1 %v732_v23 }
 0x23a   : > { %796 = vrot.lane.b32.xlu0 %v679_v2, %s1159_s23 }
 0x247   : > { %738 = vrot.lane.b32.xlu1 %v679_v2, %s1157_s21  ;;  %s1163_s21 = smov 16  }
 0x289   : > { %v673_v26 = vpop.xlane.xlu0 %672 }
 0x28a   : > { %1123 = vrcp.f32 %v673_v26 }
 0x290   : > { %v1124_v27 = vpop.eup %1123 }
 0x291   : > { %v675_v28 = vmul.f32 %v1124_v27, %v1116_v8  ;;  %v1112_v27 = vld [vmem:[%s1378_s10] ss:$0 sm:$0xff] }
 0x293   : > { %v676_v29 = vpack.c.bf16 %v675_v28, %v675_v28 }
 0x295   : > { %1054 = vmatmul.msk.bf16.vlgmr.msrb.gmra.mxu2 %vm577_vm1, %v676_v29 }
 0x299   : > { %v792_v30 = vpop.xlane.xlu0 %791 }
 0x29a   : > { %1125 = vrcp.f32 %v792_v30 }
 0x2a0   : > { %v1126_v32 = vpop.eup %1125 }
 0x2a1   : > { %v630_v31 = vpop.f32.mrf.mxu0  ;;  %v794_v34 = vmul.f32 %v1126_v32, %v1120_v19  ;;  %v734_v35 = vpop.xlane.xlu1 %733 }
 0x2a2   : > { %1127 = vrcp.f32 %v734_v35 }
 0x2a3   : > { %v795_v38 = vpack.c.bf16 %v794_v34, %v794_v34  ;;  %1129 = vrcp.f32 %v1164_v3 }
 0x2a8   : > { %v1128_v39 = vpop.eup %1127 }
 0x2a9   : > { %v632_v33 = vpop.f32.mrf.mxu0  ;;  %v736_v40 = vmul.f32 %v1128_v39, %v1122_v22  ;;  %v1130_v5 = vpop.eup %1129 }
 0x2aa   : > { %v871_v6 = vmul.f32 32.0, %v1130_v5  ;;  %vm875_vm7 = vweird.f32 %v1130_v5 }
 0x2ab   : > { %v737_v43 = vpack.c.bf16 %v736_v40, %v736_v40 }
 0x2ac   : > { %v797_v36 = vpop.permute.xlu0 %796  ;;  %v872_v7 = vsub.f32 1.0, %v871_v6 }
 0x2ad   : > { %v802_v37 = vsel %vm617_vm4, %v797_v36, 0 }
 0x2ae   : > { %811 = vmatpush.bf16.msra.mxu2 %v802_v37  ;;  %v873_v8 = vmul.f32 %v1130_v5, %v872_v7 }
 0x2b0   : > { %v874_v9 = vadd.f32 %v1130_v5, %v873_v8 }
 0x2b1   : > { %1058 = vmatmul.msk.bf16.vlgmr.msra.gmra.mxu2 %vm577_vm1, %v795_v38 }
 0x2b2   : > { %v876_v10 = vsel %vm875_vm7, %v1130_v5, %v874_v9 }
 0x2b9   : > { %v739_v41 = vpop.permute.xlu1 %738 }
 0x2ba   : > { %v744_v42 = vsel %vm617_vm4, %v739_v41, 0 }
 0x2bb   : > { %753 = vmatpush.bf16.msra.mxu0 %v744_v42 }
 0x2be   : > { %1056 = vmatmul.msk.bf16.vlgmr.msra.gmra.mxu0 %vm577_vm1, %v737_v43 }
 0x318   : > { %v697_v44 = vpop.f32.mrf.mxu2 }
 0x319   : > { %818 = vrot.lane.b32.xlu2 %v697_v44, %s1161_s15  ;;  %s460_s15 = scalar_lea.vmem %s1379_s11, %s1258_s29 }
 0x320   : > { %v699_v45 = vpop.f32.mrf.mxu2 }
 0x334   : > { %v813_v46 = vpop.f32.mrf.mxu2 }
 0x335   : > { %826 = vrot.lane.b32.xlu2 %v813_v46, %s1162_s16 }
 0x33b   : > { %v755_v47 = vpop.f32.mrf.mxu0 }
 0x33c   : > { %v815_v48 = vpop.f32.mrf.mxu2  ;;  %822 = vrot.lane.b32.xlu0 %v755_v47, %s1163_s21 }
 0x343   : > { %v757_v49 = vpop.f32.mrf.mxu0 }
 0x373   : > { %v819_v52 = vpop.permute.xlu2 %818 }
 0x374   : > { %v829_v53 = vsel %vm577_vm1, %v630_v31, %v819_v52 }
 0x38f   : > { %v827_v55 = vpop.permute.xlu2 %826 }
 0x3ae   : > { %v823_v54 = vpop.permute.xlu0 %822 }
 0x3af   : > { %v831_v56 = vsel %vm830_vm5, %v829_v53, %v823_v54 }
 0x3b0   : > { %v833_v57 = vsel %vm832_vm6, %v831_v56, %v827_v55 }
 0x3b1   : > { %v834_v58 = vpack.c.bf16 %v833_v57, %v833_v57 }
 0x3b3   : > { %1067 = vmatmul.msk.bf16.vlgmr.msra.gmra.mxu3 %vm499_vm0, %v834_v58 }
 0x436   : > { %v862_v60 = vpop.f32.mrf.mxu3 }
 0x437   : > { %v863_v61 = vadd.f32 %v1110_v59, %v862_v60 }
 0x439   : > { %v866_v62 = vadd.f32 %v863_v61, %v1264_v4 }
 0x43b   : > { %v867_v63 = vsel %vm499_vm0, %v866_v62, 0.0  ;;  %v878_v0 = vmul.f32 %v866_v62, %v866_v62 }
 0x43c   : > { %868 = vadd.xlane.f32.xlu1 %v867_v63 }
 0x43d   : > { %v879_v1 = vsel %vm499_vm0, %v878_v0, 0.0 }
 0x43e   : > { %v864_v2 = vpop.f32.mrf.mxu3  ;;  %880 = vadd.xlane.f32.xlu0 %v879_v1 }
 0x4af   : > { %v869_v11 = vpop.xlane.xlu1 %868 }
 0x4b0   : > { %v877_v12 = vmul.f32 %v876_v10, %v869_v11 }
 0x4b1   : > { %v881_v4 = vpop.xlane.xlu0 %880 }
 0x4b2   : > { %v883_v13 = vmul.f32 %v877_v12, %v877_v12  ;;  %v882_v14 = vmul.f32 %v881_v4, %v876_v10  ;;  %v886_v24 = vsub.f32 %v866_v62, %v877_v12 }
 0x4b4   : > { %v884_v15 = vsub.f32 %v882_v14, %v883_v13 }
 0x4b6   : > { %v885_v16 = vmax.f32 %v884_v15, 0.0 }
 0x4b8   : > { %v887_v17 = vadd.f32 1e-05, %v885_v16 }
 0x4ba   : > { %1131 = vrsqrt.f32 %v887_v17  ;;  %vm894_vm9 = vweird.f32 %v887_v17 }
 0x4c0   : > { %v1132_v18 = vpop.eup %1131 }
 0x4c1   : > { %v889_v19 = vmul.f32 %v1132_v18, %v887_v17  ;;  %vm895_vm8 = vweird.f32 %v1132_v18 }
 0x4c2   : > { %vm896_vm10 = vmor %vm894_vm9, %vm895_vm8 }
 0x4c3   : > { %v890_v20 = vmul.f32 %v1132_v18, %v889_v19 }
 0x4c5   : > { %v891_v21 = vmul.f32 0.5, %v890_v20 }
 0x4c7   : > { %v892_v22 = vsub.f32 1.5, %v891_v21 }
 0x4c9   : > { %v893_v23 = vmul.f32 %v1132_v18, %v892_v22 }
 0x4cb   : > { %v897_v26 = vsel %vm896_vm10, %v1132_v18, %v893_v23 }
 0x4cc   : > { %v898_v28 = vmul.f32 %v897_v26, %v886_v24 }
 0x4ce   : > { %v902_v29 = vmul.f32 %v1111_v25, %v898_v28 }
 0x4d0   : > { %v906_v30 = vadd.f32 %v1112_v27, %v902_v29 }
 0x4d2   : > { %907 = vst.msk [vmem:[%s460_s15] sm:$0xff] %vm499_vm0, %v906_v30 }
 0x4d3 PF: > { %s21_s19 = sadd.s32 1, %s1155_s19   ;;  %s1382_s17 = smov %s1151_s18 }
 0x4d4   : > { %p18_p5 = scmp.ge.s32.totalorder %s21_s19, 4   ;;  %s1383_s18 = smov %s1385_s20 }
 0x4d6   :  { %20 = sbr.rel (!%p18_p5) target bundleno = 2 (0x2), region = 103 }

// kernel: transformer_forward.15
= control target key start
LH: loop header
LB: loop body
LE: loop exit
PB: predicated region body
PF: predicated region fallthrough
CT: control target
= control target key end

     0   :  { %s1171_s13 = smov 0   ;;  %s1173_s14 = smov 0   ;;  %s1299_s0 = inlined_call_operand.vmem [shape: f32[2,8,32], index: 0, kind: input, shape index: {}, may-alias: {0,1,2}]   ;;  %s1300_s1 = inlined_call_operand.vmem [shape: f32[2,8,32], index: 1, kind: input, shape index: {}, may-alias: {0,1,2}]   ;;  %s1301_s2 = inlined_call_operand.vmem [shape: f32[2,8,32], index: 2, kind: input, shape index: {}, may-alias: {0,1,2}]   ;;  %s1302_s3 = inlined_call_operand.vmem [shape: bf16[32,32], index: 3, kind: input, shape index: {}]   ;;  %s1303_s4 = inlined_call_operand.vmem [shape: bf16[32,32], index: 4, kind: input, shape index: {}]   ;;  %s1304_s5 = inlined_call_operand.vmem [shape: bf16[32,32], index: 5, kind: input, shape index: {}]   ;;  %s1305_s6 = inlined_call_operand.vmem [shape: bf16[32,32], index: 6, kind: input, shape index: {}]   ;;  %s1306_s7 = inlined_call_operand.vmem [shape: f32[1,32], index: 7, kind: input, shape index: {}]   ;;  %s1307_s8 = inlined_call_operand.vmem [shape: f32[1,32], index: 8, kind: input, shape index: {}]   ;;  %s1308_s9 = inlined_call_operand.vmem [shape: f32[1,32], index: 9, kind: input, shape index: {}]   ;;  %s1309_s10 = inlined_call_operand.vmem [shape: f32[2,8,32], index: 10, kind: output, shape index: {}]  }
   0x1   :  { %s1175_s15 = smov 0  }
   0x2 LB: > { %s32_s16 = sadd.s32 1, %s1103_s14  ;;  %p972_p0 = scmp.ge.s32.totalorder %s1107_s15, 1  ;;  %s1107_s15 = sphi %s1175_s15, %s20_s15   ;;  %s1103_s14 = sphi %s1173_s14, %s1311_s14   ;;  %s1099_s13 = sphi %s1171_s13, %s1310_s13  }
   0x3   : > { %p34_p1 = scmp.ge.s32.totalorder %s32_s16, 2  ;;  %p348_p2 = scmp.lt.s32.totalorder %s1107_s15, 3 }
   0x5   : > { %s1313_s16 = smov (%p34_p1, %s32_s16), 0  ;;  %p349_p3 = pnand %p972_p0, %p348_p2 }
   0x6   : > { %p398_p4 = scmp.lt.s32.totalorder (!%p349_p3), %s1099_s13, 1  ;;  %s1109_s12 = smov (!%p349_p3), 112  }
   0x7   : > { %352 = sbr.rel (%p349_p3) target bundleno = 1235 (0x4d3), region = 60  ;;  %s1111_s17 = smov (!%p349_p3), 104  }
   0x8   : > { %s1112_s26 = smov (!%p349_p3), 8   ;;  %s1113_s27 = smov (!%p349_p3), 24  }
   0xc   : > { %v1024_v0 = vld [vmem:[%s1302_s3 + $0x8] sm:$0xff]  ;;  %v1023_v2 = vld [vmem:[%s1302_s3] sm:$0xff]  ;;  %s1315_s13 = smov (!%p398_p4, %s1099_s13), 1  ;;  %vm464_vm0 = vcmask 261120   ;;  %vm542_vm1 = vcmask 64512   ;;  %v422_v27 = vlaneseq  ;;  %vm579_vm3 = vcmask 1043456  }
   0xd   : > { %v1026_v1 = vld [vmem:[%s1303_s4 + $0x8] sm:$0xff]  ;;  %474 = vmatpush.bf16.msra.mxu0 %v1024_v0  ;;  %v1025_v3 = vld [vmem:[%s1303_s4] sm:$0xff]  ;;  %s1201_s25 = sshll.u32 %s1315_s13, 3  ;;  %s1110_s13 = smov 120   ;;  %vm792_vm4 = vcmask 130048   ;;  %vm794_vm5 = vcmask 195584  }
   0xe   : > { %504 = vmatpush.bf16.msra.mxu1 %v1026_v1  ;;  %s404_s28 = scalar_lea.vmem %s1299_s0, %s1201_s25  ;;  %s408_s11 = scalar_lea.vmem %s1300_s1, %s1201_s25  ;;  %v423_v28 = vshrl.u32 %v422_v27, 7  ;;  %v427_v29 = vand.u32 127, %v422_v27  ;;  %v1028_v36 = vld [vmem:[%s1304_s5 + $0x8] sm:$0xff]  ;;  %v1027_v37 = vld [vmem:[%s1304_s5] sm:$0xff] }
   0xf   : > { %v1207_v4 = vld [vmem:[%s404_s28] sm:$0xff]  ;;  %534 = vmatpush.bf16.msra.mxu2 %v1028_v36  ;;  %s412_s22 = scalar_lea.vmem %s1301_s2, %s1201_s25  ;;  %s1114_s28 = smov 16  }
  0x10   : > { %v451_v5 = vpack.c.bf16 %v1207_v4, %v1207_v4  ;;  %v430_v6 = vld [vmem:[%s408_s11] sm:$0xff]  ;;  %vm428_vm2 = vcmp.gt.s32.totalorder %v427_v29, %v423_v28  ;;  %s419_s24 = scalar_lea.vmem %s1309_s10, %s1201_s25 }
  0x11   : > { %475 = vmatpush.bf16.msra.mxu0 %v1023_v2  ;;  %v482_v7 = vpack.c.bf16 %v430_v6, %v430_v6  ;;  %v431_v38 = vld [vmem:[%s412_s22] sm:$0xff] }
  0x12   : > { %505 = vmatpush.bf16.msra.mxu1 %v1025_v3  ;;  %v512_v39 = vpack.c.bf16 %v431_v38, %v431_v38 }
  0x13   : > { %535 = vmatpush.bf16.msra.mxu2 %v1027_v37 }
  0x14   : > { %985 = vmatmul.msk.bf16.vlgmr.msra.gmra.mxu0 %vm464_vm0, %v451_v5 }
  0x15   : > { %994 = vmatmul.msk.bf16.vlgmr.msra.gmra.mxu1 %vm464_vm0, %v482_v7 }
  0x16   : > { %1003 = vmatmul.msk.bf16.vlgmr.msra.gmra.mxu2 %vm464_vm0, %v512_v39 }
  0x91   : > { %v477_v8 = vpop.f32.mrf.mxu0 }
  0x92   : > { %v481_v9 = vpack.c.bf16 %v477_v8, %v477_v8  ;;  %v507_v10 = vpop.f32.mrf.mxu1 }
  0x93   : > { %v511_v11 = vpack.c.bf16 %v507_v10, %v507_v10 }
  0x94   : > { %v597_v12 = vunpack.c.l.b16 %v481_v9 }
  0x95   : > { %v602_v13 = vunpack.c.l.b16 %v511_v11  ;;  %v547_v14 = vsel %vm542_vm1, %v511_v11, 0 }
  0x96   : > { %v598_v15 = vpack.c.b16 %v597_v12, %v597_v12  ;;  %556 = vmatpush.bf16.xpose.msra.mxu3 %v547_v14 }
  0x97   : > { %v603_v16 = vpack.c.b16 %v602_v13, %v602_v13 }
  0x98   : > { %663 = vrot.lane.b32.xlu2 %v598_v15, %s1109_s12 }
  0x99   : > { %665 = vrot.lane.b32.xlu1 %v603_v16, %s1109_s12  ;;  %604 = vrot.lane.b32.xlu0 %v603_v16, %s1110_s13  ;;  %v479_v17 = vpop.f32.mrf.mxu0  ;;  %v537_v60 = vpop.f32.mrf.mxu2 }
  0x9a   : > { %v509_v18 = vpop.f32.mrf.mxu1  ;;  %v541_v61 = vpack.c.bf16 %v537_v60, %v537_v60 }
  0x9c   : > { %v640_v62 = vunpack.c.l.b16 %v541_v61  ;;  %v581_v63 = vsel %vm579_vm3, %v541_v61, 0 }
  0x9d   : > { %1004 = vmatmul.msk.bf16.vlgmr.msra.gmra.mxu3 %vm542_vm1, %v481_v9  ;;  %590 = vmatpush.bf16.msrb.mxu0 %v581_v63 }
  0x9e   : > { %v641_v0 = vpack.c.b16 %v640_v62, %v640_v62 }
  0xa0   : > { %721 = vrot.lane.b32.xlu2 %v598_v15, %s1111_s17 }
  0xa1   : > { %723 = vrot.lane.b32.xlu1 %v603_v16, %s1111_s17  ;;  %599 = vrot.lane.b32.xlu0 %v598_v15, %s1110_s13  ;;  %v539_v1 = vpop.f32.mrf.mxu2 }
  0xf2   : > { %v664_v23 = vpop.permute.xlu2 %663 }
  0xfa   : > { %v722_v33 = vpop.permute.xlu2 %721 }
 0x10b   : > { %v666_v19 = vpop.permute.xlu1 %665  ;;  %v605_v20 = vpop.permute.xlu0 %604 }
 0x10c   : > { %v610_v21 = vsel %vm542_vm1, %v605_v20, 0  ;;  %v671_v22 = vsel %vm542_vm1, %v666_v19, 0 }
 0x10d   : > { %619 = vmatpush.bf16.xpose.msrb.mxu1 %v610_v21  ;;  %680 = vmatpush.bf16.xpose.msrb.mxu3 %v671_v22 }
 0x113   : > { %v724_v24 = vpop.permute.xlu1 %723  ;;  %v600_v25 = vpop.permute.xlu0 %599 }
 0x114   : > { %v729_v26 = vsel %vm542_vm1, %v724_v24, 0  ;;  %1006 = vmatmul.msk.bf16.vlgmr.msrb.gmra.mxu1 %vm542_vm1, %v600_v25  ;;  %1008 = vmatmul.msk.bf16.vlgmr.msrb.gmra.mxu3 %vm542_vm1, %v664_v23 }
 0x115   : > { %738 = vmatpush.bf16.xpose.msra.mxu1 %v729_v26 }
 0x120   : > { %v558_v30 = vpop.f32.mrf.mxu3 }
 0x121   : > { %v562_v31 = vsel %vm428_vm2, -1e+20, %v558_v30 }
 0x122   : > { %v563_v32 = vmul.f32 0.17677669, %v562_v31 }
 0x124   : > { %1010 = vmatmul.msk.bf16.vlgmr.msra.gmra.mxu1 %vm542_vm1, %v722_v33  ;;  %v564_v34 = vsel %vm542_vm1, %v563_v32, -inf }
 0x125   : > { %565 = vmax.xlane.f32.xlu1 %v564_v34 }
 0x128   : > { %v560_v35 = vpop.f32.mrf.mxu3 }
 0x191   : > { %v621_v40 = vpop.f32.mrf.mxu1 }
 0x192   : > { %v625_v41 = vsel %vm428_vm2, -1e+20, %v621_v40 }
 0x193   : > { %v626_v42 = vmul.f32 0.17677669, %v625_v41 }
 0x195   : > { %v627_v43 = vsel %vm542_vm1, %v626_v42, -inf }
 0x196   : > { %628 = vmax.xlane.f32.xlu0 %v627_v43 }
 0x197   : > { %v682_v44 = vpop.f32.mrf.mxu3 }
 0x198   : > { %v566_v45 = vpop.xlane.xlu1 %565  ;;  %v686_v56 = vsel %vm428_vm2, -1e+20, %v682_v44 }
 0x199   : > { %v567_v46 = vsub.f32 %v563_v32, %v566_v45  ;;  %v623_v47 = vpop.f32.mrf.mxu1  ;;  %v687_v57 = vmul.f32 0.17677669, %v686_v56 }
 0x19b   : > { %v568_v48 = vmul.f32 1.442695, %v567_v46  ;;  %v688_v59 = vsel %vm542_vm1, %v687_v57, -inf }
 0x19d   : > { %1065 = vpow2.f32 %v568_v48  ;;  %v1030_v48 = vld [vmem:[%s1305_s6 + $0x8] sm:$0xff] }
 0x19e   : > { %821 = vmatpush.bf16.msra.mxu3 %v1030_v48 }
 0x19f   : > { %v684_v49 = vpop.f32.mrf.mxu3 }
 0x1a0   : > { %v1029_v49 = vld [vmem:[%s1305_s6] sm:$0xff] }
 0x1a1   : > { %v740_v50 = vpop.f32.mrf.mxu1 }
 0x1a2   : > { %v744_v51 = vsel %vm428_vm2, -1e+20, %v740_v50  ;;  %822 = vmatpush.bf16.msra.mxu3 %v1029_v49 }
 0x1a3   : > { %v1066_v52 = vpop.eup %1065  ;;  %v745_v53 = vmul.f32 0.17677669, %v744_v51 }
 0x1a4   : > { %v570_v54 = vsel %vm542_vm1, %v1066_v52, 0.0 }
 0x1a5   : > { %571 = vadd.xlane.f32.xlu1 %v570_v54  ;;  %v746_v55 = vsel %vm542_vm1, %v745_v53, -inf }
 0x1a6   : > { %747 = vmax.xlane.f32.xlu2 %v746_v55 }
 0x1a9   : > { %v742_v58 = vpop.f32.mrf.mxu1 }
 0x1ae   : > { %689 = vmax.xlane.f32.xlu2 %v688_v59 }
 0x1c6   : > { %642 = vrot.lane.b32.xlu2 %v641_v0, %s1110_s13 }
 0x209   : > { %v629_v2 = vpop.xlane.xlu0 %628 }
 0x20a   : > { %v630_v3 = vsub.f32 %v626_v42, %v629_v2 }
 0x20c   : > { %v631_v5 = vmul.f32 1.442695, %v630_v3 }
 0x20e   : > { %1067 = vpow2.f32 %v631_v5 }
 0x214   : > { %v1068_v6 = vpop.eup %1067 }
 0x215   : > { %v633_v7 = vsel %vm542_vm1, %v1068_v6, 0.0 }
 0x216   : > { %634 = vadd.xlane.f32.xlu0 %v633_v7 }
 0x218   : > { %v572_v8 = vpop.xlane.xlu1 %571 }
 0x219   : > { %1069 = vrcp.f32 %v572_v8  ;;  %v748_v9 = vpop.xlane.xlu2 %747 }
 0x21a   : > { %v749_v10 = vsub.f32 %v745_v53, %v748_v9 }
 0x21c   : > { %v750_v11 = vmul.f32 1.442695, %v749_v10 }
 0x21e   : > { %1071 = vpow2.f32 %v750_v11 }
 0x21f   : > { %v1070_v12 = vpop.eup %1069 }
 0x220   : > { %v574_v13 = vmul.f32 %v1070_v12, %v1066_v52 }
 0x221   : > { %v690_v14 = vpop.xlane.xlu2 %689 }
 0x222   : > { %v691_v15 = vsub.f32 %v687_v57, %v690_v14  ;;  %v575_v16 = vpack.c.bf16 %v574_v13, %v574_v13  ;;  %v1062_v57 = vld [vmem:[%s1306_s7] ss:$0 sm:$0xff] }
 0x224   : > { %v1072_v17 = vpop.eup %1071  ;;  %v692_v18 = vmul.f32 1.442695, %v691_v15  ;;  %1005 = vmatmul.msk.bf16.vlgmr.msrb.gmra.mxu0 %vm542_vm1, %v575_v16 }
 0x225   : > { %v752_v19 = vsel %vm542_vm1, %v1072_v17, 0.0 }
 0x226   : > { %1073 = vpow2.f32 %v692_v18  ;;  %753 = vadd.xlane.f32.xlu0 %v752_v19 }
 0x229   : > { %v643_v22 = vpop.permute.xlu2 %642 }
 0x22a   : > { %v648_v23 = vsel %vm579_vm3, %v643_v22, 0 }
 0x22b   : > { %657 = vmatpush.bf16.msrb.mxu2 %v648_v23  ;;  %v1063_v23 = vld [vmem:[%s1307_s8] ss:$0 sm:$0xff] }
 0x22c   : > { %v1074_v20 = vpop.eup %1073 }
 0x22d   : > { %v694_v21 = vsel %vm542_vm1, %v1074_v20, 0.0 }
 0x22e   : > { %695 = vadd.xlane.f32.xlu1 %v694_v21 }
 0x23a   : > { %758 = vrot.lane.b32.xlu0 %v641_v0, %s1111_s17 }
 0x247   : > { %700 = vrot.lane.b32.xlu1 %v641_v0, %s1109_s12  ;;  %v1115_v0 = vmov 32.0  }
 0x289   : > { %v635_v24 = vpop.xlane.xlu0 %634 }
 0x28a   : > { %1075 = vrcp.f32 %v635_v24 }
 0x290   : > { %v1076_v25 = vpop.eup %1075 }
 0x291   : > { %v637_v26 = vmul.f32 %v1076_v25, %v1068_v6  ;;  %v1064_v25 = vld [vmem:[%s1308_s9] ss:$0 sm:$0xff] }
 0x293   : > { %v638_v27 = vpack.c.bf16 %v637_v26, %v637_v26 }
 0x295   : > { %1007 = vmatmul.msk.bf16.vlgmr.msrb.gmra.mxu2 %vm542_vm1, %v638_v27 }
 0x299   : > { %v754_v28 = vpop.xlane.xlu0 %753 }
 0x29a   : > { %1077 = vrcp.f32 %v754_v28 }
 0x2a0   : > { %v1078_v30 = vpop.eup %1077 }
 0x2a1   : > { %v592_v29 = vpop.f32.mrf.mxu0  ;;  %v756_v32 = vmul.f32 %v1078_v30, %v1072_v17  ;;  %v696_v33 = vpop.xlane.xlu1 %695 }
 0x2a2   : > { %1079 = vrcp.f32 %v696_v33 }
 0x2a3   : > { %v757_v36 = vpack.c.bf16 %v756_v32, %v756_v32  ;;  %1081 = vrcp.f32 %v1115_v0 }
 0x2a8   : > { %v1080_v37 = vpop.eup %1079 }
 0x2a9   : > { %v594_v31 = vpop.f32.mrf.mxu0  ;;  %v698_v38 = vmul.f32 %v1080_v37, %v1074_v20  ;;  %v1082_v1 = vpop.eup %1081 }
 0x2aa   : > { %v832_v2 = vmul.f32 32.0, %v1082_v1  ;;  %vm836_vm6 = vweird.f32 %v1082_v1 }
 0x2ab   : > { %v699_v41 = vpack.c.bf16 %v698_v38, %v698_v38 }
 0x2ac   : > { %v759_v34 = vpop.permute.xlu0 %758  ;;  %v833_v3 = vsub.f32 1.0, %v832_v2 }
 0x2ad   : > { %v764_v35 = vsel %vm579_vm3, %v759_v34, 0 }
 0x2ae   : > { %773 = vmatpush.bf16.msra.mxu2 %v764_v35  ;;  %v834_v5 = vmul.f32 %v1082_v1, %v833_v3 }
 0x2b0   : > { %v835_v6 = vadd.f32 %v1082_v1, %v834_v5 }
 0x2b1   : > { %1011 = vmatmul.msk.bf16.vlgmr.msra.gmra.mxu2 %vm542_vm1, %v757_v36 }
 0x2b2   : > { %v837_v7 = vsel %vm836_vm6, %v1082_v1, %v835_v6 }
 0x2b9   : > { %v701_v39 = vpop.permute.xlu1 %700 }
 0x2ba   : > { %v706_v40 = vsel %vm579_vm3, %v701_v39, 0 }
 0x2bb   : > { %715 = vmatpush.bf16.msra.mxu0 %v706_v40 }
 0x2be   : > { %1009 = vmatmul.msk.bf16.vlgmr.msra.gmra.mxu0 %vm542_vm1, %v699_v41 }
 0x318   : > { %v659_v42 = vpop.f32.mrf.mxu2 }
 0x319   : > { %780 = vrot.lane.b32.xlu2 %v659_v42, %s1112_s26 }
 0x320   : > { %v661_v43 = vpop.f32.mrf.mxu2 }
 0x334   : > { %v775_v44 = vpop.f32.mrf.mxu2 }
 0x335   : > { %788 = vrot.lane.b32.xlu2 %v775_v44, %s1113_s27 }
 0x33b   : > { %v717_v45 = vpop.f32.mrf.mxu0 }
 0x33c   : > { %v777_v46 = vpop.f32.mrf.mxu2  ;;  %784 = vrot.lane.b32.xlu0 %v717_v45, %s1114_s28 }
 0x343   : > { %v719_v47 = vpop.f32.mrf.mxu0 }
 0x373   : > { %v781_v50 = vpop.permute.xlu2 %780 }
 0x374   : > { %v791_v51 = vsel %vm542_vm1, %v592_v29, %v781_v50 }
 0x38f   : > { %v789_v53 = vpop.permute.xlu2 %788 }
 0x3ae   : > { %v785_v52 = vpop.permute.xlu0 %784 }
 0x3af   : > { %v793_v54 = vsel %vm792_vm4, %v791_v51, %v785_v52 }
 0x3b0   : > { %v795_v55 = vsel %vm794_vm5, %v793_v54, %v789_v53 }
 0x3b1   : > { %v796_v56 = vpack.c.bf16 %v795_v55, %v795_v55 }
 0x3b3   : > { %1020 = vmatmul.msk.bf16.vlgmr.msra.gmra.mxu3 %vm464_vm0, %v796_v56 }
 0x436   : > { %v824_v58 = vpop.f32.mrf.mxu3 }
 0x437   : > { %v825_v59 = vadd.f32 %v1062_v57, %v824_v58 }
 0x439   : > { %v828_v60 = vsel %vm464_vm0, %v825_v59, 0.0  ;;  %v839_v61 = vmul.f32 %v825_v59, %v825_v59 }
 0x43a   : > { %829 = vadd.xlane.f32.xlu1 %v828_v60 }
 0x43b   : > { %v840_v62 = vsel %vm464_vm0, %v839_v61, 0.0 }
 0x43c   : > { %841 = vadd.xlane.f32.xlu0 %v840_v62 }
 0x43e   : > { %v826_v63 = vpop.f32.mrf.mxu3 }
 0x4ad   : > { %v830_v8 = vpop.xlane.xlu1 %829 }
 0x4ae   : > { %v838_v9 = vmul.f32 %v837_v7, %v830_v8 }
 0x4af   : > { %v842_v10 = vpop.xlane.xlu0 %841 }
 0x4b0   : > { %v844_v11 = vmul.f32 %v838_v9, %v838_v9  ;;  %v843_v12 = vmul.f32 %v842_v10, %v837_v7  ;;  %v847_v22 = vsub.f32 %v825_v59, %v838_v9 }
 0x4b2   : > { %v845_v13 = vsub.f32 %v843_v12, %v844_v11 }
 0x4b4   : > { %v846_v14 = vmax.f32 %v845_v13, 0.0 }
 0x4b6   : > { %v848_v15 = vadd.f32 1e-05, %v846_v14 }
 0x4b8   : > { %1083 = vrsqrt.f32 %v848_v15  ;;  %vm855_vm8 = vweird.f32 %v848_v15 }
 0x4be   : > { %v1084_v16 = vpop.eup %1083 }
 0x4bf   : > { %v850_v17 = vmul.f32 %v1084_v16, %v848_v15  ;;  %vm856_vm7 = vweird.f32 %v1084_v16 }
 0x4c0   : > { %vm857_vm9 = vmor %vm855_vm8, %vm856_vm7 }
 0x4c1   : > { %v851_v18 = vmul.f32 %v1084_v16, %v850_v17 }
 0x4c3   : > { %v852_v19 = vmul.f32 0.5, %v851_v18 }
 0x4c5   : > { %v853_v20 = vsub.f32 1.5, %v852_v19 }
 0x4c7   : > { %v854_v21 = vmul.f32 %v1084_v16, %v853_v20 }
 0x4c9   : > { %v858_v24 = vsel %vm857_vm9, %v1084_v16, %v854_v21 }
 0x4ca   : > { %v859_v26 = vmul.f32 %v858_v24, %v847_v22 }
 0x4cc   : > { %v863_v27 = vmul.f32 %v1063_v23, %v859_v26 }
 0x4ce   : > { %v867_v28 = vadd.f32 %v1064_v25, %v863_v27 }
 0x4d0   : > { %v868_v29 = vadd.f32 %v867_v28, %v1207_v4 }
 0x4d2   : > { %869 = vst.msk [vmem:[%s419_s24] sm:$0xff] %vm464_vm0, %v868_v29 }
 0x4d3 PF: > { %s20_s15 = sadd.s32 1, %s1107_s15   ;;  %s1310_s13 = smov %s1103_s14 }
 0x4d4   : > { %p17_p5 = scmp.ge.s32.totalorder %s20_s15, 4   ;;  %s1311_s14 = smov %s1313_s16 }
 0x4d6   :  { %19 = sbr.rel (!%p17_p5) target bundleno = 2 (0x2), region = 96 }

</bundles_post_ra>
